<compile_context>
chip_gen: v6e
topology: v6e:2x2x1
jax: 0.10.0
libtpu: 0.0.40
codegen_flags: <defaults>
</compile_context>

<pallas_src>
import functools

import jax
import jax.numpy as jnp
from jax.experimental import pallas as pl
from jax.experimental.pallas import tpu as pltpu


def _round_up(n, m):
    return ((n + m - 1) // m) * m


# ----------------------------------------------------------------------------
# Fused Pallas kernel. Per batch tile, per depth slab d (static unrolled loop):
#   fv_d = x @ sel_rep[:, d-slab]          [Bt, TTC]  (MXU broadcast over leaves, bf16/f32 acc)
#   bm_d = clip(fv_d * A_d + B_d, 0, 1)    [Bt, TTC]  (lane-dense VPU; sparsemoid + bin code)
#   rw  *= bm_d                                        (leaf weights, f32)
# then:
#   out  = rw(bf16) @ resp                 [Bt, Kp]   (MXU; 1/T and head split folded in)
# ----------------------------------------------------------------------------
def fused_odst_kernel(x_ref, sel_ref, a_ref, b_ref, resp_ref, out_ref, *, depth, ttc):
    x_bf = x_ref[...].astype(jnp.bfloat16)

    rw = None
    for d in range(depth):
        lo = d * ttc
        fv_d = jnp.dot(x_bf, sel_ref[:, lo:lo + ttc],
                       preferred_element_type=jnp.float32)                    # [Bt, TTC]
        bm_d = jnp.clip(fv_d * a_ref[:, lo:lo + ttc] + b_ref[:, lo:lo + ttc],
                        0.0, 1.0)                                             # [Bt, TTC]
        rw = bm_d if rw is None else rw * bm_d

    out_ref[...] = jnp.dot(rw.astype(jnp.bfloat16), resp_ref[...],
                           preferred_element_type=jnp.float32)


# ----------------------------------------------------------------------------
# Tiling / VMEM planning (generation-aware).
# ----------------------------------------------------------------------------
def _vmem_plan():
    """Scoped VMEM limit + intermediate budget; conservative on v7x (64 MiB physical),
    generous on v5e/v6e (128 MiB)."""
    try:
        cap = int(getattr(pltpu.get_tpu_info(), "vmem_capacity_bytes", 64 * 1024 * 1024))
    except Exception:
        cap = 64 * 1024 * 1024
    limit = min(max(cap // 2, 32 * 1024 * 1024), 64 * 1024 * 1024)
    budget = max(8 * 1024 * 1024, limit - 8 * 1024 * 1024)  # headroom for compiler scratch
    return limit, budget


def _pick_batch_tile(batch, f, ttc, kp, vmem_budget_bytes, param_bytes, max_tile=1024):
    """Largest multiple-of-8 batch tile whose f32 intermediates fit the budget, capped so
    large batches still produce >=2 grid steps (v7x megacore sharding)."""
    budget = max(2 * 1024 * 1024, vmem_budget_bytes - 2 * param_bytes)  # params double-buffered
    per_row = 4 * 4 * ttc + 2 * ttc + 8 * (f + kp)   # fv_d, bm_d, rw (+slack), rw_bf16, x/out blocks
    tile = max(8, min(max_tile, (budget // max(per_row, 1)) // 8 * 8))
    if batch >= 512:
        # keep >=2 parallel grid steps (second TensorCore on v7x), but tiles >=256 rows so the
        # ~0.35 us/step pipeline overhead stays amortized.
        tile = min(tile, max(256, _round_up((batch + 1) // 2, 8)))
    return int(min(tile, _round_up(batch, 8)))


def fused_odst_forward(x, fused_params, batch_tile=None):
    sel_rep, a_vec, b_vec, resp_mat = fused_params
    b, f = x.shape
    ttc = resp_mat.shape[0]
    kp = resp_mat.shape[1]
    depth = sel_rep.shape[1] // ttc

    vmem_limit, vmem_budget = _vmem_plan()
    if batch_tile is None:
        param_bytes = (sel_rep.size * 2 + resp_mat.size * 2
                       + a_vec.size * 4 + b_vec.size * 4)
        batch_tile = _pick_batch_tile(b, f, ttc, kp, vmem_budget, param_bytes)

    b_pad = _round_up(b, batch_tile)
    if b_pad != b:
        x = jnp.pad(x, ((0, b_pad - b), (0, 0)))

    kernel = functools.partial(fused_odst_kernel, depth=depth, ttc=ttc)

    out = pl.pallas_call(
        kernel,
        out_shape=jax.ShapeDtypeStruct((b_pad, kp), jnp.float32),
        grid=(b_pad // batch_tile,),
        in_specs=[
            pl.BlockSpec((batch_tile, f), lambda i: (i, 0)),   # x: tiled over batch
            pl.BlockSpec(sel_rep.shape, lambda i: (0, 0)),     # params stay VMEM-resident
            pl.BlockSpec(a_vec.shape, lambda i: (0, 0)),
            pl.BlockSpec(b_vec.shape, lambda i: (0, 0)),
            pl.BlockSpec(resp_mat.shape, lambda i: (0, 0)),
        ],
        out_specs=pl.BlockSpec((batch_tile, kp), lambda i: (i, 0)),
        compiler_params=pltpu.CompilerParams(
            dimension_semantics=("parallel",),
            vmem_limit_bytes=vmem_limit,
        ),
    )(x, sel_rep, a_vec, b_vec, resp_mat)
    return out[:b]


# ----------------------------------------------------------------------------
# Plain-JAX glue: parameter init + one-time preprocessing (no batch data).
# ----------------------------------------------------------------------------
def sparsemax(z, axis=0):
    """Sparsemax projection along `axis` (used on feature_selection_logits)."""
    n = z.shape[axis]
    z_sorted = -jnp.sort(-z, axis=axis)
    shape = [1] * z.ndim
    shape[axis] = n
    k = jnp.arange(1, n + 1, dtype=z.dtype).reshape(shape)
    z_cumsum = jnp.cumsum(z_sorted, axis=axis)
    support = (1.0 + k * z_sorted) > z_cumsum
    k_z = jnp.sum(support.astype(jnp.int32), axis=axis, keepdims=True)
    tau_sum = jnp.take_along_axis(z_cumsum, k_z - 1, axis=axis)
    tau = (tau_sum - 1.0) / k_z.astype(z.dtype)
    return jnp.maximum(z - tau, 0.0)


def init_odst_params(key, in_features, num_trees, tree_dim, depth):
    # TODO(synk): ODST's data-aware initialize() (quantile thresholds / temperature fit on the
    # first batch) is replaced by deterministic random init, per the synthetic-weights requirement.
    k1, k2, k3 = jax.random.split(key, 3)
    return dict(
        response=jax.random.normal(k1, (num_trees, tree_dim, 2 ** depth), jnp.float32),
        sel_logits=jax.random.uniform(k2, (in_features, num_trees, depth), jnp.float32),
        thresholds=jax.random.normal(k3, (num_trees, depth), jnp.float32),
        log_temp=jnp.zeros((num_trees, depth), jnp.float32),
        depth=depth,
    )


def prep_fused(critic_p, actor_p):
    """Fuse critic + actor ODSTs into lane-dense kernel operands.

    sparsemoid symmetry + affine folding:
      bn = clip(0.5 - 0.5*(fv - thr)*invt, 0, 1),  bp = 1 - bn (exact under the clamp)
      bm(d,t,c) = bn*code0 + bp*(1-code0) = clip(fv * A + B, 0, 1)
        with sign = 2*code0 - 1, A = -0.5*invt*sign, B = 0.5 + 0.5*thr*invt*sign.
    The per-tree -> per-leaf broadcast is done by replicating sel columns xC, so fv comes
    out of the MXU already at [B, D*TT*C] and the kernel hot loop is pure lane-aligned VPU.
    """
    depth = critic_p["depth"]
    C = 2 ** depth
    sel_c = sparsemax(critic_p["sel_logits"], axis=0)   # [F, T, D]
    sel_a = sparsemax(actor_p["sel_logits"], axis=0)    # [F, T, D]
    F, T, D = sel_c.shape
    TT = 2 * T
    TTC = TT * C

    # Feature-selection matrix, columns ordered d-major, then tree, then leaf (xC replicated).
    sel = jnp.concatenate([sel_c, sel_a], axis=1)                      # [F, TT, D]
    sel_dm = jnp.transpose(sel, (0, 2, 1))                             # [F, D, TT]
    sel_rep = jnp.broadcast_to(sel_dm[:, :, :, None], (F, D, TT, C)).reshape(F, D * TTC)
    sel_rep = sel_rep.astype(jnp.bfloat16)

    thr = jnp.concatenate([critic_p["thresholds"], actor_p["thresholds"]], axis=0).T   # [D, TT]
    invt = jnp.exp(-jnp.concatenate([critic_p["log_temp"], actor_p["log_temp"]], axis=0)).T

    idx = jnp.arange(C)
    offs = 2 ** jnp.arange(depth)
    codes0 = ((idx[None, :] // offs[:, None]) % 2).astype(jnp.float32)  # [D, C]
    sign = 2.0 * codes0 - 1.0                                           # [D, C]  (+1 / -1)

    A = -0.5 * invt[:, :, None] * sign[:, None, :]                      # [D, TT, C]
    B = 0.5 + 0.5 * (thr * invt)[:, :, None] * sign[:, None, :]         # [D, TT, C]
    a_vec = A.reshape(1, D * TTC).astype(jnp.float32)
    b_vec = B.reshape(1, D * TTC).astype(jnp.float32)

    # Block response: col 0 <- critic value, cols 1..K <- actor mu; mean over trees (1/T)
    # folded in; zero-padded to Kp=128 so the output store is a long unmasked lane-dense vst.
    resp_c = jnp.transpose(critic_p["response"], (0, 2, 1)).reshape(T * C, -1) / T   # [T*C, 1]
    resp_a = jnp.transpose(actor_p["response"], (0, 2, 1)).reshape(T * C, -1) / T    # [T*C, K]
    K = resp_a.shape[1]
    Kp = _round_up(1 + K, 128)
    resp_mat = jnp.zeros((TT * C, Kp), jnp.float32)
    resp_mat = resp_mat.at[:T * C, 0:1].set(resp_c)
    resp_mat = resp_mat.at[T * C:, 1:1 + K].set(resp_a)
    resp_mat = resp_mat.astype(jnp.bfloat16)

    return (sel_rep, a_vec, b_vec, resp_mat)


class ActorCriticPallas:
    """Pallas TPU port of ActorCritic.forward (critic + actor fused into one kernel)."""

    def __init__(self, num_inputs, num_outputs, max_complexity, std=0.0, depth=6, key=None):
        key = jax.random.PRNGKey(0) if key is None else key
        kc, ka = jax.random.split(key)
        in_features = num_inputs + num_outputs + 1
        self.num_outputs = num_outputs
        self.critic_params = init_odst_params(kc, in_features, max_complexity, 1, depth)
        self.actor_params = init_odst_params(ka, in_features, max_complexity, num_outputs, depth)
        self.fused = prep_fused(self.critic_params, self.actor_params)
        self.log_std = jnp.ones((1, num_outputs), jnp.float32) * std
        self.out_feedback = jnp.zeros((1, num_outputs), jnp.float32)
        self.val_feedback = jnp.zeros((1, 1), jnp.float32)

    # --- feedback append (2-D input branch of the PyTorch module) ---
    def _append_prev_out_to_x(self, x):
        B = x.shape[0]
        fb = self.out_feedback
        if fb.ndim == 3:                       # stored as mu[None, :] after a previous forward
            fb = fb.reshape(fb.shape[1], fb.shape[2])
            if fb.shape[0] == 1 and B > 1:
                fb = jnp.broadcast_to(fb, (B, fb.shape[1]))
        else:
            fb = jnp.broadcast_to(fb.reshape(-1)[None, :], (B, self.num_outputs))
        return jnp.concatenate([x, fb.astype(x.dtype)], axis=1)

    def _append_prev_val_to_x(self, x):
        B = x.shape[0]
        vf = jnp.reshape(self.val_feedback, (-1,))
        if vf.shape[0] == 1:
            vf_col = jnp.broadcast_to(vf.reshape(1, 1), (B, 1))
        elif vf.shape[0] == B:
            vf_col = vf.reshape(B, 1)
        else:
            # TODO(synk): torch's 2-D branch builds a [B, B] tensor here (latent bug); we
            # fall back to the last stored value instead of reproducing the shape error.
            vf_col = jnp.broadcast_to(vf[-1].reshape(1, 1), (B, 1))
        return jnp.concatenate([x, vf_col.astype(x.dtype)], axis=1)

    def forward(self, x):
        x = self._append_prev_out_to_x(x)
        x = self._append_prev_val_to_x(x)

        out = fused_odst_forward(x, self.fused)           # [B, Kp]
        value = out[:, 0:1]                               # critic head
        mu = out[:, 1:1 + self.num_outputs]               # actor head

        # dist = Normal(mu, std): represented by its (mean, scale) tensors.
        std = jnp.broadcast_to(jnp.exp(self.log_std), mu.shape)

        # Mirror the PyTorch buffer updates: out_feedback <- dist.mean[None, :] ([1, B, K]),
        # val_feedback <- value ([B, 1]); both detached (no grads flow here anyway).
        self.out_feedback = mu[None, :]
        self.val_feedback = value
        return (mu, std), value


# ----------------------------------------------------------------------------
# Pure-JAX reference (unfused, per-ensemble), numerically matched to the kernel
# (bf16 matmul operands, f32 accumulation, f32 elementwise, 1/T folded pre-cast).
# ----------------------------------------------------------------------------
def _odst_ref(x, p):
    depth = p["depth"]
    T = p["thresholds"].shape[0]
    C = 2 ** depth
    sel = sparsemax(p["sel_logits"], axis=0).astype(jnp.bfloat16)            # [F, T, D]
    fv = jnp.einsum("bf,ftd->btd", x.astype(jnp.bfloat16), sel,
                    preferred_element_type=jnp.float32)
    logits = (fv - p["thresholds"][None]) * jnp.exp(-p["log_temp"])[None]
    bn = jnp.clip(0.5 - 0.5 * logits, 0.0, 1.0)
    bp = jnp.clip(0.5 + 0.5 * logits, 0.0, 1.0)
    idx = jnp.arange(C)
    offs = 2 ** jnp.arange(depth)
    c0 = ((idx[None, :] // offs[:, None]) % 2).astype(jnp.float32)
    c1 = 1.0 - c0
    bm = bn[..., None] * c0[None, None] + bp[..., None] * c1[None, None]     # [B, T, D, C]
    rw = jnp.prod(bm, axis=2)                                                # [B, T, C]
    resp = (p["response"] / T).astype(jnp.bfloat16)                          # mean folded in
    out = jnp.einsum("btc,tkc->btk", rw.astype(jnp.bfloat16), resp,
                     preferred_element_type=jnp.float32)
    return out.sum(axis=1)                                                   # [B, K]


if __name__ == "__main__":
    # Module-consistent small shapes: batch=2, num_inputs=16, num_outputs=4,
    # max_complexity (num_trees)=8, ODST depth=6 -> in_features = 16 + 4 + 1 = 21.
    num_inputs, num_outputs, max_complexity = 16, 4, 8
    key = jax.random.PRNGKey(0)
    k_model, k_x = jax.random.split(key)

    model = ActorCriticPallas(num_inputs, num_outputs, max_complexity, std=0.0, key=k_model)
    x = jax.random.normal(k_x, (2, num_inputs), jnp.float32)

    (mu, std), value = model.forward(x)
    jax.block_until_ready((mu, std, value))

    assert mu.shape == (2, num_outputs)
    assert std.shape == (2, num_outputs)
    assert value.shape == (2, 1)
    assert bool(jnp.all(jnp.isfinite(mu))) and bool(jnp.all(jnp.isfinite(value)))

    # Reference check (first forward: both feedback buffers are zeros).
    x_full = jnp.concatenate(
        [x, jnp.zeros((2, num_outputs), x.dtype), jnp.zeros((2, 1), x.dtype)], axis=1)
    value_ref = _odst_ref(x_full, model.critic_params)
    mu_ref = _odst_ref(x_full, model.actor_params)
    assert bool(jnp.allclose(value, value_ref, atol=2e-2, rtol=2e-2))
    assert bool(jnp.allclose(mu, mu_ref, atol=2e-2, rtol=2e-2))

    print("KERNEL_OK")
</pallas_src>

<mosaic_0001>
module attributes {stable_mosaic.version = 11 : i64} {
  func.func @fused_odst_kernel(%arg0: i32, %arg1: memref<8x21xf32, #tpu.memory_space<vmem>>, %arg2: memref<21x6144xbf16, #tpu.memory_space<vmem>>, %arg3: memref<1x6144xf32, #tpu.memory_space<vmem>>, %arg4: memref<1x6144xf32, #tpu.memory_space<vmem>>, %arg5: memref<1024x128xbf16, #tpu.memory_space<vmem>>, %arg6: memref<8x128xf32, #tpu.memory_space<vmem>>) attributes {dimension_semantics = [#tpu.dimension_semantics<parallel>], iteration_bounds = array<i64: 1>, scalar_prefetch = 0 : i64, scratch_operands = 0 : i64, tpu.core_type = #tpu.core_type<tc>, window_params = [{transform_indices = @transform_0, window_bounds = array<i64: 8, 21>}, {pipeline_mode = #tpu.pipeline_mode<synchronous>, transform_indices = @transform_1, window_bounds = array<i64: 21, 6144>}, {pipeline_mode = #tpu.pipeline_mode<synchronous>, transform_indices = @transform_2, window_bounds = array<i64: 1, 6144>}, {pipeline_mode = #tpu.pipeline_mode<synchronous>, transform_indices = @transform_3, window_bounds = array<i64: 1, 6144>}, {pipeline_mode = #tpu.pipeline_mode<synchronous>, transform_indices = @transform_4, window_bounds = array<i64: 1024, 128>}, {transform_indices = @transform_5, window_bounds = array<i64: 8, 128>}]} {
    %c0 = arith.constant 0 : index
    %c0_0 = arith.constant 0 : index
    %0 = vector.load %arg1[%c0, %c0_0] : memref<8x21xf32, #tpu.memory_space<vmem>>, vector<8x21xf32>
    %1 = arith.truncf %0 : vector<8x21xf32> to vector<8x21xbf16>
    %c0_1 = arith.constant 0 : index
    %c0_2 = arith.constant 0 : index
    %2 = vector.load %arg2[%c0_1, %c0_2] : memref<21x6144xbf16, #tpu.memory_space<vmem>>, vector<21x1024xbf16>
    %cst = arith.constant dense<0.000000e+00> : vector<8x1024xf32>
    %3 = tpu.matmul %1, %2, %cst {dimension_numbers = #tpu.dot_dimension_numbers<[1], [0], [0], [1], [0, 0, 1, 1], [], []>} : vector<8x21xbf16>, vector<21x1024xbf16>, vector<8x1024xf32> -> vector<8x1024xf32>
    %c0_3 = arith.constant 0 : index
    %c0_4 = arith.constant 0 : index
    %4 = vector.load %arg3[%c0_3, %c0_4] : memref<1x6144xf32, #tpu.memory_space<vmem>>, vector<1x1024xf32>
    %5 = vector.broadcast %4 : vector<1x1024xf32> to vector<8x1024xf32>
    %6 = arith.mulf %3, %5 : vector<8x1024xf32>
    %c0_5 = arith.constant 0 : index
    %c0_6 = arith.constant 0 : index
    %7 = vector.load %arg4[%c0_5, %c0_6] : memref<1x6144xf32, #tpu.memory_space<vmem>>, vector<1x1024xf32>
    %8 = vector.broadcast %7 : vector<1x1024xf32> to vector<8x1024xf32>
    %9 = arith.addf %6, %8 : vector<8x1024xf32>
    %cst_7 = arith.constant 0.000000e+00 : f32
    %cst_8 = arith.constant 1.000000e+00 : f32
    %10 = vector.broadcast %cst_7 : f32 to vector<8x1024xf32>
    %11 = arith.maximumf %10, %9 : vector<8x1024xf32>
    %12 = vector.broadcast %cst_8 : f32 to vector<8x1024xf32>
    %13 = arith.minimumf %12, %11 : vector<8x1024xf32>
    %c0_9 = arith.constant 0 : index
    %c1024 = arith.constant 1024 : index
    %14 = vector.load %arg2[%c0_9, %c1024] : memref<21x6144xbf16, #tpu.memory_space<vmem>>, vector<21x1024xbf16>
    %cst_10 = arith.constant dense<0.000000e+00> : vector<8x1024xf32>
    %15 = tpu.matmul %1, %14, %cst_10 {dimension_numbers = #tpu.dot_dimension_numbers<[1], [0], [0], [1], [0, 0, 1, 1], [], []>} : vector<8x21xbf16>, vector<21x1024xbf16>, vector<8x1024xf32> -> vector<8x1024xf32>
    %c0_11 = arith.constant 0 : index
    %c1024_12 = arith.constant 1024 : index
    %16 = vector.load %arg3[%c0_11, %c1024_12] : memref<1x6144xf32, #tpu.memory_space<vmem>>, vector<1x1024xf32>
    %17 = vector.broadcast %16 : vector<1x1024xf32> to vector<8x1024xf32>
    %18 = arith.mulf %15, %17 : vector<8x1024xf32>
    %c0_13 = arith.constant 0 : index
    %c1024_14 = arith.constant 1024 : index
    %19 = vector.load %arg4[%c0_13, %c1024_14] : memref<1x6144xf32, #tpu.memory_space<vmem>>, vector<1x1024xf32>
    %20 = vector.broadcast %19 : vector<1x1024xf32> to vector<8x1024xf32>
    %21 = arith.addf %18, %20 : vector<8x1024xf32>
    %cst_15 = arith.constant 0.000000e+00 : f32
    %cst_16 = arith.constant 1.000000e+00 : f32
    %22 = vector.broadcast %cst_15 : f32 to vector<8x1024xf32>
    %23 = arith.maximumf %22, %21 : vector<8x1024xf32>
    %24 = vector.broadcast %cst_16 : f32 to vector<8x1024xf32>
    %25 = arith.minimumf %24, %23 : vector<8x1024xf32>
    %26 = arith.mulf %13, %25 : vector<8x1024xf32>
    %c0_17 = arith.constant 0 : index
    %c2048 = arith.constant 2048 : index
    %27 = vector.load %arg2[%c0_17, %c2048] : memref<21x6144xbf16, #tpu.memory_space<vmem>>, vector<21x1024xbf16>
    %cst_18 = arith.constant dense<0.000000e+00> : vector<8x1024xf32>
    %28 = tpu.matmul %1, %27, %cst_18 {dimension_numbers = #tpu.dot_dimension_numbers<[1], [0], [0], [1], [0, 0, 1, 1], [], []>} : vector<8x21xbf16>, vector<21x1024xbf16>, vector<8x1024xf32> -> vector<8x1024xf32>
    %c0_19 = arith.constant 0 : index
    %c2048_20 = arith.constant 2048 : index
    %29 = vector.load %arg3[%c0_19, %c2048_20] : memref<1x6144xf32, #tpu.memory_space<vmem>>, vector<1x1024xf32>
    %30 = vector.broadcast %29 : vector<1x1024xf32> to vector<8x1024xf32>
    %31 = arith.mulf %28, %30 : vector<8x1024xf32>
    %c0_21 = arith.constant 0 : index
    %c2048_22 = arith.constant 2048 : index
    %32 = vector.load %arg4[%c0_21, %c2048_22] : memref<1x6144xf32, #tpu.memory_space<vmem>>, vector<1x1024xf32>
    %33 = vector.broadcast %32 : vector<1x1024xf32> to vector<8x1024xf32>
    %34 = arith.addf %31, %33 : vector<8x1024xf32>
    %cst_23 = arith.constant 0.000000e+00 : f32
    %cst_24 = arith.constant 1.000000e+00 : f32
    %35 = vector.broadcast %cst_23 : f32 to vector<8x1024xf32>
    %36 = arith.maximumf %35, %34 : vector<8x1024xf32>
    %37 = vector.broadcast %cst_24 : f32 to vector<8x1024xf32>
    %38 = arith.minimumf %37, %36 : vector<8x1024xf32>
    %39 = arith.mulf %26, %38 : vector<8x1024xf32>
    %c0_25 = arith.constant 0 : index
    %c3072 = arith.constant 3072 : index
    %40 = vector.load %arg2[%c0_25, %c3072] : memref<21x6144xbf16, #tpu.memory_space<vmem>>, vector<21x1024xbf16>
    %cst_26 = arith.constant dense<0.000000e+00> : vector<8x1024xf32>
    %41 = tpu.matmul %1, %40, %cst_26 {dimension_numbers = #tpu.dot_dimension_numbers<[1], [0], [0], [1], [0, 0, 1, 1], [], []>} : vector<8x21xbf16>, vector<21x1024xbf16>, vector<8x1024xf32> -> vector<8x1024xf32>
    %c0_27 = arith.constant 0 : index
    %c3072_28 = arith.constant 3072 : index
    %42 = vector.load %arg3[%c0_27, %c3072_28] : memref<1x6144xf32, #tpu.memory_space<vmem>>, vector<1x1024xf32>
    %43 = vector.broadcast %42 : vector<1x1024xf32> to vector<8x1024xf32>
    %44 = arith.mulf %41, %43 : vector<8x1024xf32>
    %c0_29 = arith.constant 0 : index
    %c3072_30 = arith.constant 3072 : index
    %45 = vector.load %arg4[%c0_29, %c3072_30] : memref<1x6144xf32, #tpu.memory_space<vmem>>, vector<1x1024xf32>
    %46 = vector.broadcast %45 : vector<1x1024xf32> to vector<8x1024xf32>
    %47 = arith.addf %44, %46 : vector<8x1024xf32>
    %cst_31 = arith.constant 0.000000e+00 : f32
    %cst_32 = arith.constant 1.000000e+00 : f32
    %48 = vector.broadcast %cst_31 : f32 to vector<8x1024xf32>
    %49 = arith.maximumf %48, %47 : vector<8x1024xf32>
    %50 = vector.broadcast %cst_32 : f32 to vector<8x1024xf32>
    %51 = arith.minimumf %50, %49 : vector<8x1024xf32>
    %52 = arith.mulf %39, %51 : vector<8x1024xf32>
    %c0_33 = arith.constant 0 : index
    %c4096 = arith.constant 4096 : index
    %53 = vector.load %arg2[%c0_33, %c4096] : memref<21x6144xbf16, #tpu.memory_space<vmem>>, vector<21x1024xbf16>
    %cst_34 = arith.constant dense<0.000000e+00> : vector<8x1024xf32>
    %54 = tpu.matmul %1, %53, %cst_34 {dimension_numbers = #tpu.dot_dimension_numbers<[1], [0], [0], [1], [0, 0, 1, 1], [], []>} : vector<8x21xbf16>, vector<21x1024xbf16>, vector<8x1024xf32> -> vector<8x1024xf32>
    %c0_35 = arith.constant 0 : index
    %c4096_36 = arith.constant 4096 : index
    %55 = vector.load %arg3[%c0_35, %c4096_36] : memref<1x6144xf32, #tpu.memory_space<vmem>>, vector<1x1024xf32>
    %56 = vector.broadcast %55 : vector<1x1024xf32> to vector<8x1024xf32>
    %57 = arith.mulf %54, %56 : vector<8x1024xf32>
    %c0_37 = arith.constant 0 : index
    %c4096_38 = arith.constant 4096 : index
    %58 = vector.load %arg4[%c0_37, %c4096_38] : memref<1x6144xf32, #tpu.memory_space<vmem>>, vector<1x1024xf32>
    %59 = vector.broadcast %58 : vector<1x1024xf32> to vector<8x1024xf32>
    %60 = arith.addf %57, %59 : vector<8x1024xf32>
    %cst_39 = arith.constant 0.000000e+00 : f32
    %cst_40 = arith.constant 1.000000e+00 : f32
    %61 = vector.broadcast %cst_39 : f32 to vector<8x1024xf32>
    %62 = arith.maximumf %61, %60 : vector<8x1024xf32>
    %63 = vector.broadcast %cst_40 : f32 to vector<8x1024xf32>
    %64 = arith.minimumf %63, %62 : vector<8x1024xf32>
    %65 = arith.mulf %52, %64 : vector<8x1024xf32>
    %c0_41 = arith.constant 0 : index
    %c5120 = arith.constant 5120 : index
    %66 = vector.load %arg2[%c0_41, %c5120] : memref<21x6144xbf16, #tpu.memory_space<vmem>>, vector<21x1024xbf16>
    %cst_42 = arith.constant dense<0.000000e+00> : vector<8x1024xf32>
    %67 = tpu.matmul %1, %66, %cst_42 {dimension_numbers = #tpu.dot_dimension_numbers<[1], [0], [0], [1], [0, 0, 1, 1], [], []>} : vector<8x21xbf16>, vector<21x1024xbf16>, vector<8x1024xf32> -> vector<8x1024xf32>
    %c0_43 = arith.constant 0 : index
    %c5120_44 = arith.constant 5120 : index
    %68 = vector.load %arg3[%c0_43, %c5120_44] : memref<1x6144xf32, #tpu.memory_space<vmem>>, vector<1x1024xf32>
    %69 = vector.broadcast %68 : vector<1x1024xf32> to vector<8x1024xf32>
    %70 = arith.mulf %67, %69 : vector<8x1024xf32>
    %c0_45 = arith.constant 0 : index
    %c5120_46 = arith.constant 5120 : index
    %71 = vector.load %arg4[%c0_45, %c5120_46] : memref<1x6144xf32, #tpu.memory_space<vmem>>, vector<1x1024xf32>
    %72 = vector.broadcast %71 : vector<1x1024xf32> to vector<8x1024xf32>
    %73 = arith.addf %70, %72 : vector<8x1024xf32>
    %cst_47 = arith.constant 0.000000e+00 : f32
    %cst_48 = arith.constant 1.000000e+00 : f32
    %74 = vector.broadcast %cst_47 : f32 to vector<8x1024xf32>
    %75 = arith.maximumf %74, %73 : vector<8x1024xf32>
    %76 = vector.broadcast %cst_48 : f32 to vector<8x1024xf32>
    %77 = arith.minimumf %76, %75 : vector<8x1024xf32>
    %78 = arith.mulf %65, %77 : vector<8x1024xf32>
    %79 = arith.truncf %78 : vector<8x1024xf32> to vector<8x1024xbf16>
    %c0_49 = arith.constant 0 : index
    %c0_50 = arith.constant 0 : index
    %80 = vector.load %arg5[%c0_49, %c0_50] : memref<1024x128xbf16, #tpu.memory_space<vmem>>, vector<1024x128xbf16>
    %cst_51 = arith.constant dense<0.000000e+00> : vector<8x128xf32>
    %81 = tpu.matmul %79, %80, %cst_51 {dimension_numbers = #tpu.dot_dimension_numbers<[1], [0], [0], [1], [0, 0, 1, 1], [], []>} : vector<8x1024xbf16>, vector<1024x128xbf16>, vector<8x128xf32> -> vector<8x128xf32>
    %c0_52 = arith.constant 0 : index
    %c0_53 = arith.constant 0 : index
    %82 = vector.load %arg6[%c0_52, %c0_53] : memref<8x128xf32, #tpu.memory_space<vmem>>, vector<8x128xf32>
    tpu.vector_store %arg6[%c0_52, %c0_53], %81 {strides = array<i32>} : memref<8x128xf32, #tpu.memory_space<vmem>>, vector<8x128xf32>,
    return
  }
  func.func @transform_0(%arg0: i32) -> (i32, i32) {
    %c0_i32 = arith.constant 0 : i32
    %c0_i32_0 = arith.constant 0 : i32
    return %arg0, %c0_i32 : i32, i32
  }
  func.func @transform_1(%arg0: i32) -> (i32, i32) {
    %c0_i32 = arith.constant 0 : i32
    %c0_i32_0 = arith.constant 0 : i32
    %c0_i32_1 = arith.constant 0 : i32
    return %c0_i32, %c0_i32_0 : i32, i32
  }
  func.func @transform_2(%arg0: i32) -> (i32, i32) {
    %c0_i32 = arith.constant 0 : i32
    %c0_i32_0 = arith.constant 0 : i32
    %c0_i32_1 = arith.constant 0 : i32
    return %c0_i32, %c0_i32_0 : i32, i32
  }
  func.func @transform_3(%arg0: i32) -> (i32, i32) {
    %c0_i32 = arith.constant 0 : i32
    %c0_i32_0 = arith.constant 0 : i32
    %c0_i32_1 = arith.constant 0 : i32
    return %c0_i32, %c0_i32_0 : i32, i32
  }
  func.func @transform_4(%arg0: i32) -> (i32, i32) {
    %c0_i32 = arith.constant 0 : i32
    %c0_i32_0 = arith.constant 0 : i32
    %c0_i32_1 = arith.constant 0 : i32
    return %c0_i32, %c0_i32_0 : i32, i32
  }
  func.func @transform_5(%arg0: i32) -> (i32, i32) {
    %c0_i32 = arith.constant 0 : i32
    %c0_i32_0 = arith.constant 0 : i32
    return %arg0, %c0_i32 : i32, i32
  }
}

</mosaic_0001>

<bundles_post_ra>
// kernel: tpu_custom_call.1
= control target key start
LH: loop header
LB: loop body
LE: loop exit
PB: predicated region body
PF: predicated region fallthrough
CT: control target
= control target key end

     0   :  { %10 = vsyncpa [#allocation3], 0  ;;  %s4358_s0 = inlined_call_operand.hbm [shape: f32[8,21], index: 0, kind: input, shape index: {}]   ;;  %s4359_s1 = inlined_call_operand.hbm [shape: bf16[21,6144], index: 1, kind: input, shape index: {}]   ;;  %s4360_s2 = inlined_call_operand.hbm [shape: f32[1,6144], index: 2, kind: input, shape index: {}]   ;;  %s4361_s3 = inlined_call_operand.hbm [shape: f32[1,6144], index: 3, kind: input, shape index: {}]   ;;  %s4362_s4 = inlined_call_operand.hbm [shape: bf16[1024,128], index: 4, kind: input, shape index: {}]   ;;  %s4363_s5 = inlined_call_operand.hbm [shape: f32[8,128], index: 5, kind: output, shape index: {}]  }
   0x1   :  { %11 = vsyncpa [#allocation6], 0 }
   0x2   :  { %12 = vsyncpa [#allocation9], 0 }
   0x3   :  { %13 = vsyncpa [#allocation4], 0  ;;  %s3612_s18 = smov [#allocation5]  }
   0x4   :  { %s29_s19 = sshll.u32 %s3612_s18, 4  ;;  %s30_s19 = int_to_ptr.vmem [resolvable:$true] %s29_s19 }
   0x5   :  { %s3492_s20 = scalar_lea.vmem %s30_s19, 9216  ;;  %p3497_p1 = scmp.lt.s32.totalorder %s30_s19, %s30_s19 }
   0x6   :  { %p3493_p0 = scmp.ne.s32.totalorder %s30_s19, %s3492_s20  ;;  %p3498_p2 = scmp.lt.s32.totalorder %s3492_s20, %s3492_s20 }
   0x8   :  { %p3499_p3 = por %p3498_p2, %p3497_p1 }
   0xa   :  { %p3500_p4 = pnand %p3499_p3, %p3493_p0 }
   0xc   :  { %3503 = shalt.err (!%p3500_p4)
}
   0xd   :  { %s3613_s21 = smov 3072   ;;  %s3614_s22 = smov 192  }
   0xe   :  { %35 = dma.hbm_to_vmem [thread:$0]  %s4359_s1, 9216, %s30_s19, [#allocation6], %s3613_s21, %s3613_s21, %s3614_s22  }
   0xf   :  { %s3615_s25 = smov [#allocation8]   ;;  %s3616_s27 = smov [#allocation2]  }
  0x10   :  { %s52_s26 = sshll.u32 %s3615_s25, 4  ;;  %s20_s28 = sshll.u32 %s3616_s27, 4  ;;  %s53_s26 = int_to_ptr.vmem [resolvable:$true] %s52_s26  ;;  %s21_s28 = int_to_ptr.vmem [resolvable:$true] %s20_s28 }
  0x11   :  { %s3512_s29 = scalar_lea.vmem %s53_s26, 768  ;;  %p3517_p6 = scmp.lt.s32.totalorder %s53_s26, %s53_s26 }
  0x12   :  { %p3513_p5 = scmp.ne.s32.totalorder %s53_s26, %s3512_s29  ;;  %p3518_p7 = scmp.lt.s32.totalorder %s3512_s29, %s3512_s29 }
  0x14   :  { %p3519_p8 = por %p3518_p7, %p3517_p6 }
  0x16   :  { %p3520_p9 = pnand %p3519_p8, %p3513_p5 }
  0x18   :  { %3523 = shalt.err (!%p3520_p9)
}
  0x19   :  { %55 = dma.hbm_to_vmem [thread:$0]  %s4361_s3, 768, %s53_s26, [#allocation9]  }
  0x1a   :  { %s3532_s7 = scalar_lea.vmem %s21_s28, 128  ;;  %p3537_p11 = scmp.lt.s32.totalorder %s21_s28, %s21_s28 }
  0x1b   :  { %p3533_p10 = scmp.ne.s32.totalorder %s21_s28, %s3532_s7  ;;  %p3538_p12 = scmp.lt.s32.totalorder %s3532_s7, %s3532_s7 }
  0x1d   :  { %p3539_p13 = por %p3538_p12, %p3537_p11 }
  0x1f   :  { %p3540_p0 = pnand %p3539_p13, %p3533_p10 }
  0x21   :  { %3543 = shalt.err (!%p3540_p0)
}
  0x22   :  { %23 = dma.hbm_to_vmem [thread:$0]  %s4358_s0, 128, %s21_s28, [#allocation3]  }
  0x23   :  { %s3617_s9 = smov [#allocation7]   ;;  %s3618_s11 = smov [#allocation10]  }
  0x24   :  { %s42_s10 = sshll.u32 %s3617_s9, 4  ;;  %s61_s12 = sshll.u32 %s3618_s11, 4  ;;  %s43_s10 = int_to_ptr.vmem [resolvable:$true] %s42_s10  ;;  %s62_s12 = int_to_ptr.vmem [resolvable:$true] %s61_s12 }
  0x25   :  { %s3552_s13 = scalar_lea.vmem %s43_s10, 768  ;;  %p3557_p2 = scmp.lt.s32.totalorder %s43_s10, %s43_s10 }
  0x26   :  { %p3553_p1 = scmp.ne.s32.totalorder %s43_s10, %s3552_s13  ;;  %p3558_p3 = scmp.lt.s32.totalorder %s3552_s13, %s3552_s13 }
  0x28   :  { %p3559_p4 = por %p3558_p3, %p3557_p2 }
  0x2a   :  { %p3560_p5 = pnand %p3559_p4, %p3553_p1 }
  0x2c   :  { %3563 = shalt.err (!%p3560_p5)
}
  0x2d   :  { %45 = dma.hbm_to_vmem [thread:$0]  %s4360_s2, 768, %s43_s10, [#allocation6]  }
  0x2e   :  { %s3572_s15 = scalar_lea.vmem %s62_s12, 8192  ;;  %p3577_p7 = scmp.lt.s32.totalorder %s62_s12, %s62_s12 }
  0x2f   :  { %p3573_p6 = scmp.ne.s32.totalorder %s62_s12, %s3572_s15  ;;  %p3578_p8 = scmp.lt.s32.totalorder %s3572_s15, %s3572_s15 }
  0x31   :  { %p3579_p9 = por %p3578_p8, %p3577_p7 }
  0x33   :  { %p3580_p10 = pnand %p3579_p9, %p3573_p6 }
  0x35   :  { %3583 = shalt.err (!%p3580_p10)
}
  0x36   :  { %s3619_s0 = smov 64   ;;  %s3620_s16 = smov 4  }
  0x37   :  { %67 = dma.hbm_to_vmem [thread:$0]  %s4362_s4, 8192, %s62_s12, [#allocation9], %s3619_s0, %s3619_s0, %s3620_s16  }
  0x38   :  { %3604 = dma.done.wait [#allocation3], 128  }
  0x39   :  { %3605 = vsyncadd [#allocation3], 4294967168 }
  0x3a   :  { %3606 = dma.done.wait [#allocation6], 9984  }
  0x3b   :  { %3607 = vsyncadd [#allocation6], 4294957312 }
  0x3c   :  { %3608 = dma.done.wait [#allocation9], 8960  }
  0x3d   :  { %3609 = vsyncadd [#allocation9], 4294958336  ;;  %vm162_vm0 = vcmask 1041408   ;;  %v3621_v0 = vmov 0   ;;  %vm163_vm1 = vcmask 1042432   ;;  %v3622_v1 = vmov 65535  }
  0x3e   :  { %222 = vmatprep.mubr.bf16.mxu0 %v3621_v0  ;;  %263 = vmatprep.mubr.bf16.mxu1 %v3621_v0  ;;  %v164_v2 = vsel %vm162_vm0, 4294967295, %v3622_v1  ;;  %v94_v3 = vld [vmem:[#allocation5 + $0x180] sm:$0x77]  ;;  %v95_v5 = vld [vmem:[#allocation5 + $0x188] sm:$0x77]  ;;  %v84_v26 = vld [vmem:[#allocation2] sm:$0xff] }
  0x3f   :  { %v3671_v4 = vsel %vm163_vm1, %v164_v2, 0  ;;  %v86_v6 = vld [vmem:[#allocation5] sm:$0xff]  ;;  %v3097_v7 = vcombine.high %v94_v3, %v94_v3  ;;  %v3099_v8 = vcombine.high %v95_v5, %v95_v5  ;;  %v3096_v9 = vcombine.low %v94_v3, %v94_v3  ;;  %v87_v12 = vld [vmem:[#allocation5 + $0x8] sm:$0xff]  ;;  %v96_v16 = vld [vmem:[#allocation5 + $0x190] sm:$0x77]  ;;  %s3623_s2 = smov [#allocation11]  }
  0x40   :  { %v3098_v10 = vcombine.low %v95_v5, %v95_v5  ;;  %v90_v11 = vld [vmem:[#allocation5 + $0xc0] sm:$0xff]  ;;  %v91_v13 = vld [vmem:[#allocation5 + $0xc8] sm:$0xff]  ;;  %v97_v17 = vld [vmem:[#allocation5 + $0x198] sm:$0x77]  ;;  %v3101_v22 = vcombine.high %v96_v16, %v96_v16  ;;  %v3100_v27 = vcombine.low %v96_v16, %v96_v16  ;;  %v3679_v37 = vpack.c.bf16 %v84_v26, %v84_v26  ;;  %s3077_s4 = sshll.u32 %s3623_s2, 4  ;;  %s3078_s4 = int_to_ptr.vmem [resolvable:$true] %s3077_s4 }
  0x41   :  { %v3089_v14 = vcombine.high %v86_v6, %v90_v11  ;;  %v3091_v15 = vcombine.high %v87_v12, %v91_v13  ;;  %v170_v18 = vand.u32 %v3097_v7, %v3671_v4  ;;  %v176_v19 = vand.u32 %v3099_v8, %v3671_v4  ;;  %v88_v31 = vld [vmem:[#allocation5 + $0x10] sm:$0xff]  ;;  %v89_v33 = vld [vmem:[#allocation5 + $0x18] sm:$0xff]  ;;  %v478_v35 = vld [vmem:[#allocation5 + $0x1a0] sm:$0x77]  ;;  %s3584_s19 = scalar_lea.vmem %s3078_s4, 128  ;;  %p3589_p12 = scmp.lt.s32.totalorder %s3078_s4, %s3078_s4 }
  0x42   :  { %v167_v20 = vand.u32 %v3096_v9, %v3671_v4  ;;  %v173_v21 = vand.u32 %v3098_v10, %v3671_v4  ;;  %v3088_v23 = vcombine.low %v86_v6, %v90_v11  ;;  %v3103_v24 = vcombine.high %v97_v17, %v97_v17  ;;  %v92_v32 = vld [vmem:[#allocation5 + $0xd0] sm:$0xff]  ;;  %v93_v34 = vld [vmem:[#allocation5 + $0xd8] sm:$0xff]  ;;  %v479_v36 = vld [vmem:[#allocation5 + $0x1a8] sm:$0x77]  ;;  %p3585_p11 = scmp.ne.s32.totalorder %s3078_s4, %s3584_s19  ;;  %p3590_p13 = scmp.lt.s32.totalorder %s3584_s19, %s3584_s19 }
  0x43   :  { %202 = vmatprep.subr.bf16.mxu0 %v170_v18  ;;  %243 = vmatprep.subr.bf16.mxu1 %v176_v19  ;;  %v3090_v25 = vcombine.low %v87_v12, %v91_v13  ;;  %v3102_v28 = vcombine.low %v97_v17, %v97_v17  ;;  %v182_v29 = vand.u32 %v3101_v22, %v3671_v4  ;;  %vm158_vm2 = vcmask 171008   ;;  %v470_v50 = vld [vmem:[#allocation5 + $0x20] sm:$0xff]  ;;  %v471_v52 = vld [vmem:[#allocation5 + $0x28] sm:$0xff]  ;;  %v480_v54 = vld [vmem:[#allocation5 + $0x1b0] sm:$0x77] }
  0x44   :  { %203 = vmatpush1.bf16.msra.mxu0 %v167_v20  ;;  %244 = vmatpush1.bf16.msra.mxu1 %v173_v21  ;;  %v188_v30 = vand.u32 %v3103_v24, %v3671_v4  ;;  %v179_v38 = vand.u32 %v3100_v27, %v3671_v4  ;;  %v3093_v40 = vcombine.high %v88_v31, %v92_v32  ;;  %v474_v51 = vld [vmem:[#allocation5 + $0xe0] sm:$0xff]  ;;  %v475_v53 = vld [vmem:[#allocation5 + $0xe8] sm:$0xff]  ;;  %v481_v55 = vld [vmem:[#allocation5 + $0x1b8] sm:$0x77]  ;;  %p3591_p0 = por %p3590_p13, %p3589_p12 }
  0x45   :  { %204 = vmatprep.subr.bf16.mxu0 %v3089_v14  ;;  %245 = vmatprep.subr.bf16.mxu1 %v3091_v15  ;;  %v185_v39 = vand.u32 %v3102_v28, %v3671_v4  ;;  %v3095_v41 = vcombine.high %v89_v33, %v93_v34  ;;  %v3117_v42 = vcombine.high %v478_v35, %v478_v35  ;;  %v472_v3 = vld [vmem:[#allocation5 + $0x30] sm:$0xff]  ;;  %v473_v8 = vld [vmem:[#allocation5 + $0x38] sm:$0xff]  ;;  %v862_v10 = vld [vmem:[#allocation5 + $0x1c0] sm:$0x77] }
  0x46   :  { %v3119_v43 = vcombine.high %v479_v36, %v479_v36  ;;  %v3092_v44 = vcombine.low %v88_v31, %v92_v32  ;;  %v3094_v45 = vcombine.low %v89_v33, %v93_v34  ;;  %v3116_v46 = vcombine.low %v478_v35, %v478_v35  ;;  %v476_v5 = vld [vmem:[#allocation5 + $0xf0] sm:$0xff]  ;;  %v477_v9 = vld [vmem:[#allocation5 + $0xf8] sm:$0xff]  ;;  %v863_v11 = vld [vmem:[#allocation5 + $0x1c8] sm:$0x77]  ;;  %p3592_p1 = pnand %p3591_p0, %p3585_p11 }
  0x47   :  { %v3118_v47 = vcombine.low %v479_v36, %v479_v36  ;;  %v546_v48 = vand.u32 %v3117_v42, %v3671_v4  ;;  %v3109_v58 = vcombine.high %v470_v50, %v474_v51  ;;  %v3111_v59 = vcombine.high %v471_v52, %v475_v53  ;;  %v854_v19 = vld [vmem:[#allocation5 + $0x40] sm:$0xff]  ;;  %v855_v24 = vld [vmem:[#allocation5 + $0x48] sm:$0xff]  ;;  %v864_v26 = vld [vmem:[#allocation5 + $0x1d0] sm:$0x77] }
  0x48   :  { %205 = vmatpush1.bf16.msra.mxu0 %v3088_v23  ;;  %246 = vmatpush1.bf16.msra.mxu1 %v3090_v25  ;;  %v552_v49 = vand.u32 %v3119_v43, %v3671_v4  ;;  %v543_v56 = vand.u32 %v3116_v46, %v3671_v4  ;;  %v3121_v60 = vcombine.high %v480_v54, %v480_v54  ;;  %v858_v20 = vld [vmem:[#allocation5 + $0x100] sm:$0xff]  ;;  %v859_v25 = vld [vmem:[#allocation5 + $0x108] sm:$0xff]  ;;  %v865_v27 = vld [vmem:[#allocation5 + $0x1d8] sm:$0x77] }
  0x49   :  { %284 = vmatprep.subr.bf16.mxu0 %v182_v29  ;;  %325 = vmatprep.subr.bf16.mxu1 %v188_v30  ;;  %v549_v57 = vand.u32 %v3118_v47, %v3671_v4  ;;  %v3123_v61 = vcombine.high %v481_v55, %v481_v55  ;;  %v3108_v62 = vcombine.low %v470_v50, %v474_v51  ;;  %v857_v43 = vld [vmem:[#allocation5 + $0x58] sm:$0xff]  ;;  %v1247_v46 = vld [vmem:[#allocation5 + $0x1e8] sm:$0x77] }
  0x4a   :  { %v3110_v63 = vcombine.low %v471_v52, %v475_v53  ;;  %v3120_v1 = vcombine.low %v480_v54, %v480_v54  ;;  %v3122_v2 = vcombine.low %v481_v55, %v481_v55  ;;  %v558_v6 = vand.u32 %v3121_v60, %v3671_v4 }
  0x4b   :  { %3104 = vmatmul.mubr.msk.bf16.vlgmr.msra.gmra.mxu0 %vm158_vm2, %v3679_v37  ;;  %3105 = vmatmul.mubr.msk.bf16.vlgmr.msra.gmra.mxu1 %vm158_vm2, %v3679_v37  ;;  %v564_v7 = vand.u32 %v3123_v61, %v3671_v4  ;;  %v3113_v14 = vcombine.high %v472_v3, %v476_v5  ;;  %v3115_v15 = vcombine.high %v473_v8, %v477_v9  ;;  %v1239_v61 = vld [vmem:[#allocation5 + $0x68] sm:$0xff] }
  0x4c   :  { %285 = vmatpush1.bf16.msra.mxu0 %v179_v38  ;;  %326 = vmatpush1.bf16.msra.mxu1 %v185_v39  ;;  %v555_v12 = vand.u32 %v3120_v1, %v3671_v4  ;;  %v561_v13 = vand.u32 %v3122_v2, %v3671_v4  ;;  %v3137_v16 = vcombine.high %v862_v10, %v862_v10  ;;  %v856_v38 = vld [vmem:[#allocation5 + $0x50] sm:$0xff]  ;;  %v1249_v1 = vld [vmem:[#allocation5 + $0x1f8] sm:$0x77] }
  0x4d   :  { %286 = vmatprep.subr.bf16.mxu0 %v3093_v40  ;;  %327 = vmatprep.subr.bf16.mxu1 %v3095_v41  ;;  %v3139_v17 = vcombine.high %v863_v11, %v863_v11  ;;  %v3112_v18 = vcombine.low %v472_v3, %v476_v5  ;;  %v3114_v21 = vcombine.low %v473_v8, %v477_v9  ;;  %v860_v39 = vld [vmem:[#allocation5 + $0x110] sm:$0xff] }
  0x4e   :  { %304 = vmatprep.mubr.bf16.mxu0 %v3621_v0  ;;  %345 = vmatprep.mubr.bf16.mxu1 %v3621_v0  ;;  %v3136_v22 = vcombine.low %v862_v10, %v862_v10  ;;  %v3138_v23 = vcombine.low %v863_v11, %v863_v11  ;;  %v930_v28 = vand.u32 %v3137_v16, %v3671_v4 }
  0x4f   :  { %v936_v29 = vand.u32 %v3139_v17, %v3671_v4  ;;  %v3129_v32 = vcombine.high %v854_v19, %v858_v20  ;;  %v3131_v33 = vcombine.high %v855_v24, %v859_v25  ;;  %v3141_v34 = vcombine.high %v864_v26, %v864_v26  ;;  %v1241_v17 = vld [vmem:[#allocation5 + $0x78] sm:$0xff] }
  0x50   :  { %287 = vmatpush1.bf16.msra.mxu0 %v3092_v44  ;;  %328 = vmatpush1.bf16.msra.mxu1 %v3094_v45  ;;  %v927_v30 = vand.u32 %v3136_v22, %v3671_v4  ;;  %v933_v31 = vand.u32 %v3138_v23, %v3671_v4  ;;  %v3143_v35 = vcombine.high %v865_v27, %v865_v27  ;;  %v861_v44 = vld [vmem:[#allocation5 + $0x118] sm:$0xff]  ;;  %v1246_v45 = vld [vmem:[#allocation5 + $0x1e0] sm:$0x77] }
  0x51   :  { %578 = vmatprep.subr.bf16.mxu0 %v546_v48  ;;  %619 = vmatprep.subr.bf16.mxu1 %v552_v49  ;;  %v3128_v36 = vcombine.low %v854_v19, %v858_v20  ;;  %v3130_v40 = vcombine.low %v855_v24, %v859_v25  ;;  %v3140_v41 = vcombine.low %v864_v26, %v864_v26  ;;  %v1630_v19 = vld [vmem:[#allocation5 + $0x200] sm:$0x77]  ;;  %v1631_v20 = vld [vmem:[#allocation5 + $0x208] sm:$0x77] }
  0x52   :  { %v3142_v42 = vcombine.low %v865_v27, %v865_v27  ;;  %v942_v47 = vand.u32 %v3141_v34, %v3671_v4  ;;  %v948_v48 = vand.u32 %v3143_v35, %v3671_v4  ;;  %v3133_v51 = vcombine.high %v856_v38, %v860_v39  ;;  %v1623_v35 = vld [vmem:[#allocation5 + $0x88] sm:$0xff] }
  0x53   :  { %3106 = vmatmul.mubr.msk.bf16.vlgmr.msra.gmra.mxu0 %vm158_vm2, %v3679_v37  ;;  %3107 = vmatmul.mubr.msk.bf16.vlgmr.msra.gmra.mxu1 %vm158_vm2, %v3679_v37  ;;  %v939_v49 = vand.u32 %v3140_v41, %v3671_v4  ;;  %v3135_v52 = vcombine.high %v857_v43, %v861_v44  ;;  %v3157_v53 = vcombine.high %v1246_v45, %v1246_v45 }
  0x54   :  { %579 = vmatpush1.bf16.msra.mxu0 %v543_v56  ;;  %620 = vmatpush1.bf16.msra.mxu1 %v549_v57  ;;  %v945_v50 = vand.u32 %v3142_v42, %v3671_v4  ;;  %v3159_v54 = vcombine.high %v1247_v46, %v1247_v46  ;;  %v3132_v55 = vcombine.low %v856_v38, %v860_v39  ;;  %v1238_v56 = vld [vmem:[#allocation5 + $0x60] sm:$0xff]  ;;  %v1632_v38 = vld [vmem:[#allocation5 + $0x210] sm:$0x77]  ;;  %v1633_v39 = vld [vmem:[#allocation5 + $0x218] sm:$0x77] }
  0x55   :  { %580 = vmatprep.subr.bf16.mxu0 %v3109_v58  ;;  %621 = vmatprep.subr.bf16.mxu1 %v3111_v59  ;;  %v1242_v57 = vld [vmem:[#allocation5 + $0x120] sm:$0xff]  ;;  %v3134_v58 = vcombine.low %v857_v43, %v861_v44  ;;  %v3156_v59 = vcombine.low %v1246_v45, %v1246_v45  ;;  %v3158_v60 = vcombine.low %v1247_v46, %v1247_v46 }
  0x56   :  { %598 = vmatprep.mubr.bf16.mxu0 %v3621_v0  ;;  %639 = vmatprep.mubr.bf16.mxu1 %v3621_v0  ;;  %v1314_v2 = vand.u32 %v3157_v53, %v3671_v4  ;;  %v1320_v3 = vand.u32 %v3159_v54, %v3671_v4  ;;  %v3163_v10 = vcombine.high %v1249_v1, %v1249_v1  ;;  %v1624_v54 = vld [vmem:[#allocation5 + $0x90] sm:$0xff] }
  0x57   :  { %v1311_v5 = vand.u32 %v3156_v59, %v3671_v4  ;;  %v3148_v11 = vcombine.low %v1238_v56, %v1242_v57  ;;  %v3162_v16 = vcombine.low %v1249_v1, %v1249_v1  ;;  %v3177_v27 = vcombine.high %v1630_v19, %v1630_v19  ;;  %v2015_v59 = vld [vmem:[#allocation5 + $0x228] sm:$0x77] }
  0x58   :  { %581 = vmatpush1.bf16.msra.mxu0 %v3108_v62  ;;  %622 = vmatpush1.bf16.msra.mxu1 %v3110_v63  ;;  %v1243_v62 = vld [vmem:[#allocation5 + $0x128] sm:$0xff]  ;;  %v1248_v63 = vld [vmem:[#allocation5 + $0x1f0] sm:$0x77]  ;;  %v1332_v22 = vand.u32 %v3163_v10, %v3671_v4  ;;  %v3178_v34 = vcombine.low %v1631_v20, %v1631_v20  ;;  %v3181_v46 = vcombine.high %v1632_v38, %v1632_v38  ;;  %v2006_v10 = vld [vmem:[#allocation5 + $0xa0] sm:$0xff] }
  0x59   :  { %660 = vmatprep.subr.bf16.mxu0 %v558_v6  ;;  %701 = vmatprep.subr.bf16.mxu1 %v564_v7  ;;  %v1317_v6 = vand.u32 %v3158_v60, %v3671_v4  ;;  %v3149_v7 = vcombine.high %v1238_v56, %v1242_v57  ;;  %v3151_v8 = vcombine.high %v1239_v61, %v1243_v62  ;;  %v1625_v56 = vld [vmem:[#allocation5 + $0x98] sm:$0xff] }
  0x5a   :  { %v3161_v9 = vcombine.high %v1248_v63, %v1248_v63  ;;  %v1329_v24 = vand.u32 %v3162_v16, %v3671_v4  ;;  %v1701_v43 = vand.u32 %v3178_v34, %v3671_v4  ;;  %v1629_v57 = vld [vmem:[#allocation5 + $0x158] sm:$0xff] }
  0x5b   :  { %3124 = vmatmul.mubr.msk.bf16.vlgmr.msra.gmra.mxu0 %vm158_vm2, %v3679_v37  ;;  %3125 = vmatmul.mubr.msk.bf16.vlgmr.msra.gmra.mxu1 %vm158_vm2, %v3679_v37 }
  0x5c   :  { %661 = vmatpush1.bf16.msra.mxu0 %v555_v12  ;;  %702 = vmatpush1.bf16.msra.mxu1 %v561_v13  ;;  %v1240_v12 = vld [vmem:[#allocation5 + $0x70] sm:$0xff] }
  0x5d   :  { %662 = vmatprep.subr.bf16.mxu0 %v3113_v14  ;;  %703 = vmatprep.subr.bf16.mxu1 %v3115_v15  ;;  %v1244_v13 = vld [vmem:[#allocation5 + $0x130] sm:$0xff]  ;;  %v3150_v14 = vcombine.low %v1239_v61, %v1243_v62  ;;  %v3160_v15 = vcombine.low %v1248_v63, %v1248_v63  ;;  %v3175_v63 = vcombine.high %v1625_v56, %v1629_v57 }
  0x5e   :  { %680 = vmatprep.mubr.bf16.mxu0 %v3621_v0  ;;  %721 = vmatprep.mubr.bf16.mxu1 %v3621_v0  ;;  %v3153_v25 = vcombine.high %v1240_v12, %v1244_v13 }
  0x5f   :  { %v1323_v23 = vand.u32 %v3160_v15, %v3671_v4  ;;  %v2017_v15 = vld [vmem:[#allocation5 + $0x238] sm:$0x77] }
  0x60   :  { %663 = vmatpush1.bf16.msra.mxu0 %v3112_v18  ;;  %704 = vmatpush1.bf16.msra.mxu1 %v3114_v21  ;;  %v1245_v18 = vld [vmem:[#allocation5 + $0x138] sm:$0xff]  ;;  %v1326_v21 = vand.u32 %v3161_v9, %v3671_v4 }
  0x61   :  { %962 = vmatprep.subr.bf16.mxu0 %v930_v28  ;;  %1003 = vmatprep.subr.bf16.mxu1 %v936_v29  ;;  %v3155_v26 = vcombine.high %v1241_v17, %v1245_v18  ;;  %v3179_v28 = vcombine.high %v1631_v20, %v1631_v20  ;;  %v3152_v29 = vcombine.low %v1240_v12, %v1244_v13  ;;  %v2007_v12 = vld [vmem:[#allocation5 + $0xa8] sm:$0xff] }
  0x62   :  { %v2011_v13 = vld [vmem:[#allocation5 + $0x168] sm:$0xff] }
  0x63   :  { %3126 = vmatmul.mubr.msk.bf16.vlgmr.msra.gmra.mxu0 %vm158_vm2, %v3679_v37  ;;  %3127 = vmatmul.mubr.msk.bf16.vlgmr.msra.gmra.mxu1 %vm158_vm2, %v3679_v37  ;;  %v1704_v41 = vand.u32 %v3179_v28, %v3671_v4  ;;  %v2008_v28 = vld [vmem:[#allocation5 + $0xb0] sm:$0xff] }
  0x64   :  { %963 = vmatpush1.bf16.msra.mxu0 %v927_v30  ;;  %1004 = vmatpush1.bf16.msra.mxu1 %v933_v31  ;;  %v1622_v30 = vld [vmem:[#allocation5 + $0x80] sm:$0xff] }
  0x65   :  { %964 = vmatprep.subr.bf16.mxu0 %v3129_v32  ;;  %1005 = vmatprep.subr.bf16.mxu1 %v3131_v33  ;;  %v1626_v31 = vld [vmem:[#allocation5 + $0x140] sm:$0xff]  ;;  %v3154_v32 = vcombine.low %v1241_v17, %v1245_v18  ;;  %v3176_v33 = vcombine.low %v1630_v19, %v1630_v19  ;;  %v3191_v19 = vcombine.high %v2007_v12, %v2011_v13 }
  0x66   :  { %982 = vmatprep.mubr.bf16.mxu0 %v3621_v0  ;;  %1023 = vmatprep.mubr.bf16.mxu1 %v3621_v0  ;;  %v3169_v44 = vcombine.high %v1622_v30, %v1626_v31 }
  0x67   :  { %v1695_v42 = vand.u32 %v3176_v33, %v3671_v4 }
  0x68   :  { %965 = vmatpush1.bf16.msra.mxu0 %v3128_v36  ;;  %1006 = vmatpush1.bf16.msra.mxu1 %v3130_v40  ;;  %v1627_v36 = vld [vmem:[#allocation5 + $0x148] sm:$0xff]  ;;  %v1698_v40 = vand.u32 %v3177_v27, %v3671_v4 }
  0x69   :  { %1044 = vmatprep.subr.bf16.mxu0 %v942_v47  ;;  %1085 = vmatprep.subr.bf16.mxu1 %v948_v48  ;;  %v3171_v45 = vcombine.high %v1623_v35, %v1627_v36  ;;  %v3183_v47 = vcombine.high %v1633_v39, %v1633_v39  ;;  %v3168_v48 = vcombine.low %v1622_v30, %v1626_v31  ;;  %v2009_v30 = vld [vmem:[#allocation5 + $0xb8] sm:$0xff] }
  0x6a   :  { %v2013_v31 = vld [vmem:[#allocation5 + $0x178] sm:$0xff] }
  0x6b   :  { %3144 = vmatmul.mubr.msk.bf16.vlgmr.msra.gmra.mxu0 %vm158_vm2, %v3679_v37  ;;  %3145 = vmatmul.mubr.msk.bf16.vlgmr.msra.gmra.mxu1 %vm158_vm2, %v3679_v37  ;;  %v1716_v53 = vand.u32 %v3183_v47, %v3671_v4  ;;  %v3430_v47 = vld [vmem:[#allocation10 + $0x28] sm:$0xff]  }
  0x6c   :  { %1045 = vmatpush1.bf16.msra.mxu0 %v939_v49  ;;  %1086 = vmatpush1.bf16.msra.mxu1 %v945_v50  ;;  %v3170_v49 = vcombine.low %v1623_v35, %v1627_v36  ;;  %v3180_v50 = vcombine.low %v1632_v38, %v1632_v38  ;;  %v3195_v35 = vcombine.high %v2009_v30, %v2013_v31 }
  0x6d   :  { %1046 = vmatprep.subr.bf16.mxu0 %v3133_v51  ;;  %1087 = vmatprep.subr.bf16.mxu1 %v3135_v52  ;;  %v3182_v51 = vcombine.low %v1633_v39, %v1633_v39  ;;  %v1710_v52 = vand.u32 %v3181_v46, %v3671_v4  ;;  %v3194_v38 = vcombine.low %v2009_v30, %v2013_v31  ;;  %v3421_v39 = vld [vmem:[#allocation10 + $0xf8] sm:$0xff]   ;;  %v3429_v46 = vld [vmem:[#allocation10 + $0xe8] sm:$0xff]  }
  0x6e   :  { %1064 = vmatprep.mubr.bf16.mxu0 %v3621_v0  ;;  %1105 = vmatprep.mubr.bf16.mxu1 %v3621_v0  ;;  %v1707_v60 = vand.u32 %v3180_v50, %v3671_v4  ;;  %v3434_v50 = vld [vmem:[#allocation10 + $0x20] sm:$0xff]  }
  0x6f   :  { %v1713_v61 = vand.u32 %v3182_v51, %v3671_v4  ;;  %v3435_v51 = vld [vmem:[#allocation10 + $0xa0] sm:$0xff]  }
  0x70   :  { %1047 = vmatpush1.bf16.msra.mxu0 %v3132_v55  ;;  %1088 = vmatpush1.bf16.msra.mxu1 %v3134_v58  ;;  %v1628_v55 = vld [vmem:[#allocation5 + $0x150] sm:$0xff]  ;;  %v2014_v58 = vld [vmem:[#allocation5 + $0x220] sm:$0x77] }
  0x71   :  { %1346 = vmatprep.subr.bf16.mxu0 %v1314_v2  ;;  %1387 = vmatprep.subr.bf16.mxu1 %v1320_v3  ;;  %v3173_v62 = vcombine.high %v1624_v54, %v1628_v55  ;;  %v3197_v1 = vcombine.high %v2014_v58, %v2014_v58  ;;  %v3199_v2 = vcombine.high %v2015_v59, %v2015_v59 }
  0x72   :  { %v3172_v3 = vcombine.low %v1624_v54, %v1628_v55  ;;  %v3438_v54 = vld [vmem:[#allocation10 + $0x18] sm:$0xff]  }
  0x73   :  { %3146 = vmatmul.mubr.msk.bf16.vlgmr.msra.gmra.mxu0 %vm158_vm2, %v3679_v37  ;;  %3147 = vmatmul.mubr.msk.bf16.vlgmr.msra.gmra.mxu1 %vm158_vm2, %v3679_v37  ;;  %v2088_v9 = vand.u32 %v3199_v2, %v3671_v4  ;;  %v3439_v55 = vld [vmem:[#allocation10 + $0x98] sm:$0xff]   ;;  %v3449_v2 = vld [vmem:[#allocation10 + $0xc0] sm:$0xff]  }
  0x74   :  { %1347 = vmatpush1.bf16.msra.mxu0 %v1311_v5  ;;  %1388 = vmatpush1.bf16.msra.mxu1 %v1317_v6  ;;  %v3174_v5 = vcombine.low %v1625_v56, %v1629_v57  ;;  %v3196_v6 = vcombine.low %v2014_v58, %v2014_v58  ;;  %v3440_v56 = vld [vmem:[#allocation10 + $0x50] sm:$0xff]  }
  0x75   :  { %1348 = vmatprep.subr.bf16.mxu0 %v3149_v7  ;;  %1389 = vmatprep.subr.bf16.mxu1 %v3151_v8  ;;  %v3198_v7 = vcombine.low %v2015_v59, %v2015_v59  ;;  %v2082_v8 = vand.u32 %v3197_v1, %v3671_v4  ;;  %v3441_v57 = vld [vmem:[#allocation10 + $0xd0] sm:$0xff]   ;;  %v3448_v1 = vld [vmem:[#allocation10 + $0x40] sm:$0xff]  }
  0x76   :  { %1366 = vmatprep.mubr.bf16.mxu0 %v3621_v0  ;;  %1407 = vmatprep.mubr.bf16.mxu1 %v3621_v0  ;;  %v2079_v16 = vand.u32 %v3196_v6, %v3671_v4  ;;  %v3442_v58 = vld [vmem:[#allocation10 + $0x10] sm:$0xff]   ;;  %v3452_v6 = vld [vmem:[#allocation10 + $0x178] sm:$0xff]  }
  0x77   :  { %v2085_v17 = vand.u32 %v3198_v7, %v3671_v4  ;;  %v3443_v59 = vld [vmem:[#allocation10 + $0x90] sm:$0xff]   ;;  %v3453_v7 = vld [vmem:[#allocation10 + $0x1f8] sm:$0xff]  }
  0x78   :  { %1349 = vmatpush1.bf16.msra.mxu0 %v3148_v11  ;;  %1390 = vmatpush1.bf16.msra.mxu1 %v3150_v14  ;;  %v2010_v11 = vld [vmem:[#allocation5 + $0x160] sm:$0xff]  ;;  %v2016_v14 = vld [vmem:[#allocation5 + $0x230] sm:$0x77] }
  0x79   :  { %1428 = vmatprep.subr.bf16.mxu0 %v1326_v21  ;;  %1469 = vmatprep.subr.bf16.mxu1 %v1332_v22  ;;  %v3189_v18 = vcombine.high %v2006_v10, %v2010_v11  ;;  %v3201_v20 = vcombine.high %v2016_v14, %v2016_v14  ;;  %v3203_v21 = vcombine.high %v2017_v15, %v2017_v15 }
  0x7a   :  { %v3188_v22 = vcombine.low %v2006_v10, %v2010_v11 }
  0x7b   :  { %3164 = vmatmul.mubr.msk.bf16.vlgmr.msra.gmra.mxu0 %vm158_vm2, %v3679_v37  ;;  %3165 = vmatmul.mubr.msk.bf16.vlgmr.msra.gmra.mxu1 %vm158_vm2, %v3679_v37  ;;  %v2100_v27 = vand.u32 %v3203_v21, %v3671_v4 }
  0x7c   :  { %1429 = vmatpush1.bf16.msra.mxu0 %v1323_v23  ;;  %1470 = vmatpush1.bf16.msra.mxu1 %v1329_v24  ;;  %v3190_v23 = vcombine.low %v2007_v12, %v2011_v13  ;;  %v3200_v24 = vcombine.low %v2016_v14, %v2016_v14  ;;  %v356_v14 = vlaneseq }
  0x7d   :  { %1430 = vmatprep.subr.bf16.mxu0 %v3153_v25  ;;  %1471 = vmatprep.subr.bf16.mxu1 %v3155_v26  ;;  %v3202_v25 = vcombine.low %v2017_v15, %v2017_v15  ;;  %v2094_v26 = vand.u32 %v3201_v20, %v3671_v4 }
  0x7e   :  { %1448 = vmatprep.mubr.bf16.mxu0 %v3621_v0  ;;  %1489 = vmatprep.mubr.bf16.mxu1 %v3621_v0 }
  0x7f   :  { %v2097_v33 = vand.u32 %v3202_v25, %v3671_v4 }
  0x80   :  { %1431 = vmatpush1.bf16.msra.mxu0 %v3152_v29  ;;  %1472 = vmatpush1.bf16.msra.mxu1 %v3154_v32  ;;  %v2012_v29 = vld [vmem:[#allocation5 + $0x170] sm:$0xff]  ;;  %v2091_v32 = vand.u32 %v3200_v24, %v3671_v4  ;;  %v3420_v4 = vld [vmem:[#allocation10 + $0x78] sm:$0xff]  }
  0x81   :  { %1730 = vmatprep.subr.bf16.mxu0 %v1698_v40  ;;  %1771 = vmatprep.subr.bf16.mxu1 %v1704_v41  ;;  %v3193_v34 = vcombine.high %v2008_v28, %v2012_v29  ;;  %v3192_v36 = vcombine.low %v2008_v28, %v2012_v29  ;;  %v3422_v40 = vld [vmem:[#allocation10 + $0x38] sm:$0xff]   ;;  %v3809_v28 = vld [vmem:[#allocation7] sm:$0xff] }
  0x82   :  { %v3423_v41 = vld [vmem:[#allocation10 + $0xb8] sm:$0xff]  }
  0x83   :  { %3166 = vmatmul.mubr.msk.bf16.vlgmr.msra.gmra.mxu0 %vm158_vm2, %v3679_v37  ;;  %3167 = vmatmul.mubr.msk.bf16.vlgmr.msra.gmra.mxu1 %vm158_vm2, %v3679_v37 }
  0x84   :  { %1731 = vmatpush1.bf16.msra.mxu0 %v1695_v42  ;;  %1772 = vmatpush1.bf16.msra.mxu1 %v1701_v43  ;;  %v3424_v42 = vld [vmem:[#allocation10 + $0x70] sm:$0xff]  }
  0x85   :  { %1732 = vmatprep.subr.bf16.mxu0 %v3169_v44  ;;  %1773 = vmatprep.subr.bf16.mxu1 %v3171_v45  ;;  %v3425_v43 = vld [vmem:[#allocation10 + $0xf0] sm:$0xff]   ;;  %v3428_v45 = vld [vmem:[#allocation10 + $0x68] sm:$0xff]  }
  0x86   :  { %1750 = vmatprep.mubr.bf16.mxu0 %v3621_v0  ;;  %1791 = vmatprep.mubr.bf16.mxu1 %v3621_v0  ;;  %v3426_v44 = vld [vmem:[#allocation10 + $0x30] sm:$0xff]  }
  0x88   :  { %1733 = vmatpush1.bf16.msra.mxu0 %v3168_v48  ;;  %1774 = vmatpush1.bf16.msra.mxu1 %v3170_v49  ;;  %v3432_v48 = vld [vmem:[#allocation10 + $0x60] sm:$0xff]  }
  0x89   :  { %1812 = vmatprep.subr.bf16.mxu0 %v1710_v52  ;;  %1853 = vmatprep.subr.bf16.mxu1 %v1716_v53  ;;  %v3433_v49 = vld [vmem:[#allocation10 + $0xe0] sm:$0xff]   ;;  %v3436_v52 = vld [vmem:[#allocation10 + $0x58] sm:$0xff]  }
  0x8a   :  { %v3437_v53 = vld [vmem:[#allocation10 + $0xd8] sm:$0xff]  }
  0x8b   :  { %3184 = vmatmul.mubr.msk.bf16.vlgmr.msra.gmra.mxu0 %vm158_vm2, %v3679_v37  ;;  %3185 = vmatmul.mubr.msk.bf16.vlgmr.msra.gmra.mxu1 %vm158_vm2, %v3679_v37 }
  0x8c   :  { %1813 = vmatpush1.bf16.msra.mxu0 %v1707_v60  ;;  %1854 = vmatpush1.bf16.msra.mxu1 %v1713_v61  ;;  %v3444_v60 = vld [vmem:[#allocation10 + $0x48] sm:$0xff]  }
  0x8d   :  { %1814 = vmatprep.subr.bf16.mxu0 %v3173_v62  ;;  %1855 = vmatprep.subr.bf16.mxu1 %v3175_v63  ;;  %v3445_v61 = vld [vmem:[#allocation10 + $0xc8] sm:$0xff]  }
  0x8e   :  { %1832 = vmatprep.mubr.bf16.mxu0 %v3621_v0  ;;  %1873 = vmatprep.mubr.bf16.mxu1 %v3621_v0  ;;  %v3446_v62 = vld [vmem:[#allocation10 + $0x8] sm:$0xff]  }
  0x8f   :  { %v3447_v63 = vld [vmem:[#allocation10 + $0x88] sm:$0xff]  }
  0x90   :  { %1815 = vmatpush1.bf16.msra.mxu0 %v3172_v3  ;;  %1856 = vmatpush1.bf16.msra.mxu1 %v3174_v5  ;;  %v3450_v3 = vld [vmem:[#allocation10] sm:$0xff]  }
  0x91   :  { %2114 = vmatprep.subr.bf16.mxu0 %v2082_v8  ;;  %2155 = vmatprep.subr.bf16.mxu1 %v2088_v9  ;;  %v3451_v5 = vld [vmem:[#allocation10 + $0x80] sm:$0xff]  }
  0x93   :  { %3186 = vmatmul.mubr.msk.bf16.vlgmr.msra.gmra.mxu0 %vm158_vm2, %v3679_v37  ;;  %3187 = vmatmul.mubr.msk.bf16.vlgmr.msra.gmra.mxu1 %vm158_vm2, %v3679_v37 }
  0x94   :  { %2115 = vmatpush1.bf16.msra.mxu0 %v2079_v16  ;;  %2156 = vmatpush1.bf16.msra.mxu1 %v2085_v17 }
  0x95   :  { %2116 = vmatprep.subr.bf16.mxu0 %v3189_v18  ;;  %2157 = vmatprep.subr.bf16.mxu1 %v3191_v19  ;;  %v357_v19 = vshrl.u32 %v356_v14, 7 }
  0x96   :  { %2134 = vmatprep.mubr.bf16.mxu0 %v3621_v0  ;;  %2175 = vmatprep.mubr.bf16.mxu1 %v3621_v0 }
  0x98   :  { %2117 = vmatpush1.bf16.msra.mxu0 %v3188_v22  ;;  %2158 = vmatpush1.bf16.msra.mxu1 %v3190_v23  ;;  %v3805_v22 = vsub.s32 4, %v357_v19  ;;  %v3807_v23 = vsub.s32 6, %v357_v19 }
  0x99   :  { %2196 = vmatprep.subr.bf16.mxu0 %v2094_v26  ;;  %2237 = vmatprep.subr.bf16.mxu1 %v2100_v27 }
  0x9a   :  { %v375_v29 = vrot.slane %v3809_v28, %v3805_v22  ;;  %v383_v30 = vrot.slane %v3809_v28, %v3807_v23 }
  0x9b   :  { %3204 = vmatmul.mubr.msk.bf16.vlgmr.msra.gmra.mxu0 %vm158_vm2, %v3679_v37  ;;  %3205 = vmatmul.mubr.msk.bf16.vlgmr.msra.gmra.mxu1 %vm158_vm2, %v3679_v37 }
  0x9c   :  { %2197 = vmatpush1.bf16.msra.mxu0 %v2091_v32  ;;  %2238 = vmatpush1.bf16.msra.mxu1 %v2097_v33 }
  0x9d   :  { %2198 = vmatprep.subr.bf16.mxu0 %v3193_v34  ;;  %2239 = vmatprep.subr.bf16.mxu1 %v3195_v35  ;;  %v3823_v35 = vld [vmem:[#allocation8] sm:$0xff] }
  0x9e   :  { %2216 = vmatprep.mubr.bf16.mxu0 %v3621_v0  ;;  %2257 = vmatprep.mubr.bf16.mxu1 %v3621_v0  ;;  %v3427_v0 = vld [vmem:[#allocation10 + $0xb0] sm:$0xff]  }
  0xa0   :  { %2199 = vmatpush1.bf16.msra.mxu0 %v3192_v36  ;;  %2240 = vmatpush1.bf16.msra.mxu1 %v3194_v38  ;;  %v425_v38 = vrot.slane %v3823_v35, %v3805_v22 }
  0xa1   :  { %3272 = vmatprep.subr.bf16.mxu0 %v3420_v4  ;;  %3294 = vmatprep.subr.bf16.mxu1 %v3421_v39  ;;  %v433_v39 = vrot.slane %v3823_v35, %v3807_v23 }
  0xa3   :  { %3206 = vmatmul.mubr.msk.bf16.vlgmr.msra.gmra.mxu0 %vm158_vm2, %v3679_v37  ;;  %3207 = vmatmul.mubr.msk.bf16.vlgmr.msra.gmra.mxu1 %vm158_vm2, %v3679_v37  ;;  %v3431_v37 = vld [vmem:[#allocation10 + $0xa8] sm:$0xff]  }
  0xa4   :  { %3273 = vmatpush3.bf16.msra.mxu0 %v3422_v40  ;;  %3295 = vmatpush3.bf16.msra.mxu1 %v3423_v41 }
  0xa5   :  { %3274 = vmatprep.subr.bf16.mxu0 %v3424_v42  ;;  %3296 = vmatprep.subr.bf16.mxu1 %v3425_v43  ;;  %v3829_v42 = vld [vmem:[#allocation7 + $0x8] sm:$0xff] }
  0xa8   :  { %3275 = vmatpush3.bf16.msra.mxu0 %v3426_v44  ;;  %3297 = vmatpush3.bf16.msra.mxu1 %v3427_v0  ;;  %v751_v0 = vrot.slane %v3829_v42, %v3805_v22 }
  0xa9   :  { %3276 = vmatprep.subr.bf16.mxu0 %v3428_v45  ;;  %3298 = vmatprep.subr.bf16.mxu1 %v3429_v46  ;;  %v759_v45 = vrot.slane %v3829_v42, %v3807_v23  ;;  %v3835_v46 = vld [vmem:[#allocation8 + $0x8] sm:$0xff] }
  0xac   :  { %3277 = vmatpush3.bf16.msra.mxu0 %v3430_v47  ;;  %3299 = vmatpush3.bf16.msra.mxu1 %v3431_v37 }
  0xad   :  { %3278 = vmatprep.subr.bf16.mxu0 %v3432_v48  ;;  %3300 = vmatprep.subr.bf16.mxu1 %v3433_v49  ;;  %v801_v49 = vrot.slane %v3835_v46, %v3805_v22 }
  0xb0   :  { %3279 = vmatpush3.bf16.msra.mxu0 %v3434_v50  ;;  %3301 = vmatpush3.bf16.msra.mxu1 %v3435_v51  ;;  %v809_v51 = vrot.slane %v3835_v46, %v3807_v23 }
  0xb1   :  { %3280 = vmatprep.subr.bf16.mxu0 %v3436_v52  ;;  %3302 = vmatprep.subr.bf16.mxu1 %v3437_v53  ;;  %v3841_v52 = vsub.s32 0, %v357_v19 }
  0xb4   :  { %3281 = vmatpush3.bf16.msra.mxu0 %v3438_v54  ;;  %3303 = vmatpush3.bf16.msra.mxu1 %v3439_v55 }
  0xb5   :  { %3282 = vmatprep.subr.bf16.mxu0 %v3440_v56  ;;  %3304 = vmatprep.subr.bf16.mxu1 %v3441_v57  ;;  %v3847_v57 = vsub.s32 2, %v357_v19 }
  0xb8   :  { %3283 = vmatpush3.bf16.msra.mxu0 %v3442_v58  ;;  %3305 = vmatpush3.bf16.msra.mxu1 %v3443_v59  ;;  %v3849_v58 = vsub.s32 1, %v357_v19  ;;  %v3851_v59 = vsub.s32 3, %v357_v19 }
  0xb9   :  { %3284 = vmatprep.subr.bf16.mxu0 %v3444_v60  ;;  %3306 = vmatprep.subr.bf16.mxu1 %v3445_v61 }
  0xbc   :  { %3285 = vmatpush3.bf16.msra.mxu0 %v3446_v62  ;;  %3307 = vmatpush3.bf16.msra.mxu1 %v3447_v63 }
  0xbd   :  { %3286 = vmatprep.subr.bf16.mxu0 %v3448_v1  ;;  %3308 = vmatprep.subr.bf16.mxu1 %v3449_v2 }
  0xc0   :  { %3287 = vmatpush3.bf16.msra.mxu0 %v3450_v3  ;;  %3309 = vmatpush3.bf16.msra.mxu1 %v3451_v5  ;;  %v3853_v3 = vsub.s32 5, %v357_v19  ;;  %v3855_v5 = vsub.s32 7, %v357_v19  ;;  %v371_v19 = vrot.slane %v3809_v28, %v3851_v59 }
  0xc1   :  { %3316 = vmatprep.subr.bf16.mxu0 %v3452_v6  ;;  %3338 = vmatprep.subr.bf16.mxu1 %v3453_v7  ;;  %v359_v6 = vrot.slane %v3809_v28, %v3841_v52  ;;  %v409_v7 = vrot.slane %v3823_v35, %v3841_v52 }
 0x10b   :  { %v3793_v8 = vpop.f32.mrf.mxu0  ;;  %v3795_v9 = vpop.f32.mrf.mxu1 }
 0x10d   :  { %v3797_v10 = vpop.f32.mrf.mxu0  ;;  %v3799_v11 = vpop.f32.mrf.mxu1 }
 0x10f   :  { %v228_v12 = vpop.f32.mrf.mxu0  ;;  %v269_v13 = vpop.f32.mrf.mxu1 }
 0x111   :  { %v229_v15 = vpop.f32.mrf.mxu0  ;;  %v270_v16 = vpop.f32.mrf.mxu1 }
 0x112   :  { %v367_v16 = vrot.slane %v3809_v28, %v3847_v57 }
 0x113   :  { %v306_v17 = vpop.f32.mrf.mxu0  ;;  %v347_v18 = vpop.f32.mrf.mxu1 }
 0x114   :  { %v400_v36 = vmul.f32 %v375_v29, %v306_v17  ;;  %v402_v4 = vmul.f32 %v383_v30, %v347_v18  ;;  %v417_v17 = vrot.slane %v3823_v35, %v3847_v57  ;;  %v363_v18 = vrot.slane %v3809_v28, %v3849_v58 }
 0x115   :  { %v3801_v20 = vpop.f32.mrf.mxu0  ;;  %v3803_v21 = vpop.f32.mrf.mxu1 }
 0x116   :  { %v450_v47 = vadd.f32 %v425_v38, %v400_v36  ;;  %v452_v37 = vadd.f32 %v433_v39, %v402_v4  ;;  %v413_v36 = vrot.slane %v3823_v35, %v3849_v58  ;;  %v421_v38 = vrot.slane %v3823_v35, %v3851_v59 }
 0x117   :  { %v310_v24 = vpop.f32.mrf.mxu0  ;;  %v351_v25 = vpop.f32.mrf.mxu1  ;;  %v379_v4 = vrot.slane %v3809_v28, %v3853_v3  ;;  %v387_v39 = vrot.slane %v3809_v28, %v3855_v5 }
 0x118   :  { %v458_v60 = vmax.f32 %v450_v47, 0.0  ;;  %v460_v61 = vmax.f32 %v452_v37, 0.0  ;;  %v735_v47 = vrot.slane %v3829_v42, %v3841_v52 }
 0x119   :  { %v311_v26 = vpop.f32.mrf.mxu0  ;;  %v352_v27 = vpop.f32.mrf.mxu1 }
 0x11a   :  { %v466_v24 = vmin.f32 %v458_v60, 1.0  ;;  %v468_v25 = vmin.f32 %v460_v61, 1.0  ;;  %v3911_v61 = vld [vmem:[#allocation8 + $0x10] sm:$0xff] }
 0x11b   :  { %v3815_v31 = vpop.f32.mrf.mxu0  ;;  %v3817_v32 = vpop.f32.mrf.mxu1 }
 0x11d   :  { %v3819_v33 = vpop.f32.mrf.mxu0  ;;  %v3821_v34 = vpop.f32.mrf.mxu1 }
 0x11f   :  { %v604_v40 = vpop.f32.mrf.mxu0  ;;  %v645_v41 = vpop.f32.mrf.mxu1 }
 0x121   :  { %v605_v43 = vpop.f32.mrf.mxu0  ;;  %v646_v44 = vpop.f32.mrf.mxu1 }
 0x123   :  { %v682_v48 = vpop.f32.mrf.mxu0  ;;  %v723_v50 = vpop.f32.mrf.mxu1 }
 0x124   :  { %v776_v53 = vmul.f32 %v751_v0, %v682_v48  ;;  %v778_v54 = vmul.f32 %v759_v45, %v723_v50  ;;  %v743_v48 = vrot.slane %v3829_v42, %v3847_v57  ;;  %v3901_v50 = vld [vmem:[#allocation7 + $0x10] sm:$0xff] }
 0x125   :  { %v3843_v55 = vpop.f32.mrf.mxu0  ;;  %v3845_v56 = vpop.f32.mrf.mxu1 }
 0x126   :  { %v826_v62 = vadd.f32 %v801_v49, %v776_v53  ;;  %v828_v63 = vadd.f32 %v809_v51, %v778_v54  ;;  %v739_v51 = vrot.slane %v3829_v42, %v3849_v58  ;;  %v747_v54 = vrot.slane %v3829_v42, %v3851_v59 }
 0x127   :  { %v686_v1 = vpop.f32.mrf.mxu0  ;;  %v727_v2 = vpop.f32.mrf.mxu1 }
 0x128   :  { %v834_v12 = vmax.f32 %v826_v62, 0.0  ;;  %v836_v13 = vmax.f32 %v828_v63, 0.0  ;;  %v3937_v2 = vld [vmem:[#allocation7 + $0x18] sm:$0xff]  ;;  %v3947_v1 = vld [vmem:[#allocation8 + $0x18] sm:$0xff] }
 0x129   :  { %v687_v14 = vpop.f32.mrf.mxu0  ;;  %v728_v15 = vpop.f32.mrf.mxu1 }
 0x12a   :  { %v842_v26 = vmin.f32 %v834_v12, 1.0  ;;  %v844_v27 = vmin.f32 %v836_v13, 1.0  ;;  %v1135_v12 = vrot.slane %v3901_v50, %v3805_v22  ;;  %v1143_v13 = vrot.slane %v3901_v50, %v3807_v23 }
 0x12b   :  { %v3869_v29 = vpop.f32.mrf.mxu0  ;;  %v3871_v30 = vpop.f32.mrf.mxu1  ;;  %v1185_v14 = vrot.slane %v3911_v61, %v3805_v22  ;;  %v1193_v15 = vrot.slane %v3911_v61, %v3807_v23 }
 0x12c   :  { %v3885_v43 = vmul.f32 %v842_v26, %v466_v24  ;;  %v3887_v44 = vmul.f32 %v844_v27, %v468_v25 }
 0x12d   :  { %v3889_v0 = vpop.f32.mrf.mxu0  ;;  %v3891_v45 = vpop.f32.mrf.mxu1 }
 0x12f   :  { %v988_v62 = vpop.f32.mrf.mxu0  ;;  %v1029_v63 = vpop.f32.mrf.mxu1 }
 0x131   :  { %v989_v26 = vpop.f32.mrf.mxu0  ;;  %v1030_v27 = vpop.f32.mrf.mxu1 }
 0x132   :  { %v3969_v26 = vld [vmem:[#allocation7 + $0x20] sm:$0xff] }
 0x133   :  { %v1066_v62 = vpop.f32.mrf.mxu0  ;;  %v1107_v25 = vpop.f32.mrf.mxu1 }
 0x134   :  { %v1160_v60 = vmul.f32 %v1135_v12, %v1066_v62  ;;  %v1162_v53 = vmul.f32 %v1143_v13, %v1107_v25 }
 0x135   :  { %v3953_v37 = vpop.f32.mrf.mxu0  ;;  %v3957_v27 = vpop.f32.mrf.mxu1 }
 0x136   :  { %v1210_v25 = vadd.f32 %v1185_v14, %v1160_v60  ;;  %v1212_v62 = vadd.f32 %v1193_v15, %v1162_v53  ;;  %v3979_v14 = vld [vmem:[#allocation8 + $0x20] sm:$0xff]  ;;  %v1887_v53 = vrot.slane %v3969_v26, %v3841_v52  ;;  %v4037_v60 = vld [vmem:[#allocation8 + $0x28] sm:$0xff] }
 0x137   :  { %v1070_v41 = vpop.f32.mrf.mxu0  ;;  %v1111_v40 = vpop.f32.mrf.mxu1 }
 0x138   :  { %v1218_v15 = vmax.f32 %v1210_v25, 0.0  ;;  %v1220_v49 = vmax.f32 %v1212_v62, 0.0  ;;  %v4009_v41 = vld [vmem:[#allocation7 + $0x28] sm:$0xff]  ;;  %v401_v40 = vmul.f32 %v379_v4, %v3801_v20 }
 0x139   :  { %v1071_v24 = vpop.f32.mrf.mxu0  ;;  %v1112_v63 = vpop.f32.mrf.mxu1 }
 0x13a   :  { %v1226_v62 = vmin.f32 %v1218_v15, 1.0  ;;  %v1228_v13 = vmin.f32 %v1220_v49, 1.0  ;;  %v1949_v49 = vrot.slane %v3979_v14, %v3851_v59  ;;  %v396_v15 = vmul.f32 %v359_v6, %v3793_v8 }
 0x13b   :  { %v3997_v63 = vpop.f32.mrf.mxu0  ;;  %v3999_v12 = vpop.f32.mrf.mxu1  ;;  %v397_v8 = vmul.f32 %v363_v18, %v3797_v10  ;;  %v403_v10 = vmul.f32 %v387_v39, %v3803_v21  ;;  %v774_v18 = vmul.f32 %v743_v48, %v3817_v32  ;;  %v773_v39 = vmul.f32 %v739_v51, %v3819_v33 }
 0x13c   :  { %v4012_v24 = vmul.f32 %v1226_v62, %v3885_v43  ;;  %v4015_v25 = vmul.f32 %v1228_v13, %v3887_v44  ;;  %v398_v43 = vmul.f32 %v367_v16, %v3795_v9  ;;  %v399_v9 = vmul.f32 %v371_v19, %v3799_v11 }
 0x13d   :  { %v4029_v62 = vpop.f32.mrf.mxu0  ;;  %v4031_v44 = vpop.f32.mrf.mxu1  ;;  %v772_v11 = vmul.f32 %v735_v47, %v3815_v31  ;;  %v446_v31 = vadd.f32 %v409_v7, %v396_v15  ;;  %v775_v47 = vmul.f32 %v747_v54, %v3821_v34  ;;  %v447_v7 = vadd.f32 %v413_v36, %v397_v8 }
 0x13e   :  { %v448_v32 = vadd.f32 %v417_v17, %v398_v43  ;;  %v449_v17 = vadd.f32 %v421_v38, %v399_v9  ;;  %v4364_v51 = vrot.slane %v3823_v35, %v3853_v3  ;;  %v4365_v54 = vrot.slane %v3823_v35, %v3855_v5 }
 0x13f   :  { %v1372_v19 = vpop.f32.mrf.mxu0  ;;  %v1413_v13 = vpop.f32.mrf.mxu1  ;;  %v4366_v36 = vrot.slane %v3835_v46, %v3841_v52  ;;  %v4367_v38 = vrot.slane %v3835_v46, %v3847_v57 }
 0x140   :  { %v451_v34 = vadd.f32 %v4364_v51, %v401_v40  ;;  %v453_v43 = vadd.f32 %v4365_v54, %v403_v10  ;;  %v456_v51 = vmax.f32 %v448_v32, 0.0  ;;  %v455_v40 = vmax.f32 %v447_v7, 0.0 }
 0x141   :  { %v1373_v48 = vpop.f32.mrf.mxu0  ;;  %v1414_v13 = vpop.f32.mrf.mxu1  ;;  %v822_v8 = vadd.f32 %v4366_v36, %v772_v11  ;;  %v824_v9 = vadd.f32 %v4367_v38, %v774_v18  ;;  %v454_v11 = vmax.f32 %v446_v31, 0.0  ;;  %v4368_v18 = vrot.slane %v3835_v46, %v3849_v58 }
 0x142   :  { %v4369_v36 = vrot.slane %v3835_v46, %v3851_v59  ;;  %v457_v15 = vmax.f32 %v449_v17, 0.0  ;;  %v4370_v10 = vrot.slane %v3829_v42, %v3853_v3  ;;  %v4371_v32 = vrot.slane %v3829_v42, %v3855_v5 }
 0x143   :  { %v4111_v19 = vpop.f32.mrf.mxu0  ;;  %v4113_v48 = vpop.f32.mrf.mxu1  ;;  %v823_v54 = vadd.f32 %v4368_v18, %v773_v39  ;;  %v459_v18 = vmax.f32 %v451_v34, 0.0  ;;  %v461_v35 = vmax.f32 %v453_v43, 0.0  ;;  %v830_v28 = vmax.f32 %v822_v8, 0.0 }
 0x144   :  { %v825_v38 = vadd.f32 %v4369_v36, %v775_v47  ;;  %v777_v31 = vmul.f32 %v4370_v10, %v3843_v55  ;;  %v779_v39 = vmul.f32 %v4371_v32, %v3845_v56  ;;  %v832_v47 = vmax.f32 %v824_v9, 0.0 }
 0x145   :  { %v4129_v13 = vpop.f32.mrf.mxu0  ;;  %v4131_v33 = vpop.f32.mrf.mxu1  ;;  %v4372_v7 = vrot.slane %v3901_v50, %v3841_v52  ;;  %v4373_v55 = vrot.slane %v3901_v50, %v3847_v57  ;;  %v4374_v42 = vrot.slane %v3901_v50, %v3849_v58  ;;  %v4375_v34 = vrot.slane %v3901_v50, %v3851_v59 }
 0x146   :  { %v462_v43 = vmin.f32 %v454_v11, 1.0  ;;  %v464_v8 = vmin.f32 %v456_v51, 1.0  ;;  %v831_v9 = vmax.f32 %v823_v54, 0.0  ;;  %v833_v32 = vmax.f32 %v825_v38, 0.0 }
 0x147   :  { %v1454_v36 = vpop.f32.mrf.mxu0  ;;  %v1495_v21 = vpop.f32.mrf.mxu1  ;;  %v1156_v17 = vmul.f32 %v4372_v7, %v3869_v29  ;;  %v1158_v10 = vmul.f32 %v4373_v55, %v3871_v30  ;;  %v1157_v56 = vmul.f32 %v4374_v42, %v3889_v0  ;;  %v463_v7 = vmin.f32 %v455_v40, 1.0 }
 0x148   :  { %v1159_v21 = vmul.f32 %v4375_v34, %v3891_v45  ;;  %v465_v4 = vmin.f32 %v457_v15, 1.0  ;;  %v4376_v30 = vrot.slane %v3835_v46, %v3853_v3  ;;  %v4377_v0 = vrot.slane %v3835_v46, %v3855_v5 }
 0x149   :  { %v1455_v29 = vpop.f32.mrf.mxu0  ;;  %v1496_v36 = vpop.f32.mrf.mxu1  ;;  %v467_v20 = vmin.f32 %v459_v18, 1.0  ;;  %v469_v16 = vmin.f32 %v461_v35, 1.0  ;;  %v838_v6 = vmin.f32 %v830_v28, 1.0  ;;  %v840_v45 = vmin.f32 %v832_v47, 1.0 }
 0x14a   :  { %v827_v55 = vadd.f32 %v4376_v30, %v777_v31  ;;  %v829_v42 = vadd.f32 %v4377_v0, %v779_v39  ;;  %v4378_v54 = vrot.slane %v3911_v61, %v3841_v52  ;;  %v4379_v15 = vrot.slane %v3911_v61, %v3847_v57 }
 0x14b   :  { %v1752_v11 = vpop.f32.mrf.mxu0  ;;  %v1793_v51 = vpop.f32.mrf.mxu1  ;;  %v4380_v31 = vrot.slane %v3911_v61, %v3849_v58  ;;  %v4381_v46 = vrot.slane %v3911_v61, %v3851_v59  ;;  %v839_v28 = vmin.f32 %v831_v9, 1.0  ;;  %v841_v39 = vmin.f32 %v833_v32, 1.0 }
 0x14c   :  { %v1206_v38 = vadd.f32 %v4378_v54, %v1156_v17  ;;  %v1208_v40 = vadd.f32 %v4379_v15, %v1158_v10  ;;  %v4382_v18 = vrot.slane %v3937_v2, %v3841_v52  ;;  %v4383_v17 = vrot.slane %v3937_v2, %v3847_v57 }
 0x14d   :  { %v1207_v34 = vadd.f32 %v4380_v31, %v1157_v56  ;;  %v1209_v35 = vadd.f32 %v4381_v46, %v1159_v21  ;;  %v1754_v29 = vpop.f32.mrf.mxu0  ;;  %v1795_v36 = vpop.f32.mrf.mxu1  ;;  %v835_v30 = vmax.f32 %v827_v55, 0.0  ;;  %v837_v56 = vmax.f32 %v829_v42, 0.0 }
 0x14e   :  { %v1540_v47 = vmul.f32 %v4382_v18, %v3997_v63  ;;  %v1542_v10 = vmul.f32 %v4383_v17, %v3999_v12  ;;  %v4384_v21 = vrot.slane %v3901_v50, %v3853_v3  ;;  %v4385_v32 = vrot.slane %v3901_v50, %v3855_v5 }
 0x14f   :  { %v846_v63 = vmul.f32 %v838_v6, %v462_v43  ;;  %v848_v54 = vmul.f32 %v840_v45, %v464_v8  ;;  %v4386_v12 = vrot.slane %v3937_v2, %v3849_v58  ;;  %v4387_v55 = vrot.slane %v3937_v2, %v3851_v59  ;;  %v1756_v31 = vpop.f32.mrf.mxu0  ;;  %v1797_v46 = vpop.f32.mrf.mxu1 }
 0x150   :  { %v1161_v9 = vmul.f32 %v4384_v21, %v3953_v37  ;;  %v1163_v0 = vmul.f32 %v4385_v32, %v3957_v27  ;;  %v1214_v37 = vmax.f32 %v1206_v38, 0.0  ;;  %v1216_v18 = vmax.f32 %v1208_v40, 0.0 }
 0x151   :  { %v1541_v15 = vmul.f32 %v4386_v12, %v4029_v62  ;;  %v1543_v42 = vmul.f32 %v4387_v55, %v4031_v44  ;;  %v1215_v17 = vmax.f32 %v1207_v34, 0.0  ;;  %v1217_v21 = vmax.f32 %v1209_v35, 0.0  ;;  %v1757_v45 = vpop.f32.mrf.mxu0  ;;  %v1798_v32 = vpop.f32.mrf.mxu1 }
 0x152   :  { %v847_v50 = vmul.f32 %v839_v28, %v463_v7  ;;  %v849_v27 = vmul.f32 %v841_v39, %v465_v4  ;;  %v4388_v6 = vrot.slane %v3947_v1, %v3841_v52  ;;  %v4389_v62 = vrot.slane %v3947_v1, %v3847_v57 }
 0x153   :  { %v843_v12 = vmin.f32 %v835_v30, 1.0  ;;  %v845_v44 = vmin.f32 %v837_v56, 1.0  ;;  %v4390_v38 = vrot.slane %v3911_v61, %v3853_v3  ;;  %v4391_v7 = vrot.slane %v3911_v61, %v3855_v5  ;;  %v4223_v56 = vpop.f32.mrf.mxu0  ;;  %v4225_v61 = vpop.f32.mrf.mxu1 }
 0x154   :  { %v1590_v43 = vadd.f32 %v4388_v6, %v1540_v47  ;;  %v1592_v8 = vadd.f32 %v4389_v62, %v1542_v10  ;;  %v4392_v34 = vrot.slane %v3947_v1, %v3849_v58  ;;  %v4393_v28 = vrot.slane %v3947_v1, %v3851_v59 }
 0x155   :  { %v1211_v40 = vadd.f32 %v4390_v38, %v1161_v9  ;;  %v1213_v4 = vadd.f32 %v4391_v7, %v1163_v0  ;;  %v1924_v47 = vmul.f32 %v1887_v53, %v1752_v11  ;;  %v4394_v10 = vrot.slane %v3969_v26, %v3847_v57  ;;  %v1836_v62 = vpop.f32.mrf.mxu0 }
 0x156   :  { %v1591_v35 = vadd.f32 %v4392_v34, %v1541_v15  ;;  %v1593_v39 = vadd.f32 %v4393_v28, %v1543_v42  ;;  %v1222_v9 = vmin.f32 %v1214_v37, 1.0  ;;  %v1224_v0 = vmin.f32 %v1216_v18, 1.0 }
 0x157   :  { %v1926_v30 = vmul.f32 %v4394_v10, %v1793_v51  ;;  %v1223_v55 = vmin.f32 %v1215_v17, 1.0  ;;  %v1225_v15 = vmin.f32 %v1217_v21, 1.0  ;;  %v1598_v31 = vmax.f32 %v1590_v43, 0.0  ;;  %v1877_v51 = vpop.f32.mrf.mxu1  ;;  %v1838_v7 = vpop.f32.mrf.mxu0 }
 0x158   :  { %v1600_v46 = vmax.f32 %v1592_v8, 0.0  ;;  %v4395_v42 = vrot.slane %v3969_v26, %v3849_v58  ;;  %v4396_v53 = vrot.slane %v3969_v26, %v3851_v59  ;;  %v4233_v45 = vmul.f32 %v843_v12, %v467_v20 }
 0x159   :  { %v4235_v32 = vmul.f32 %v845_v44, %v469_v16  ;;  %v1219_v37 = vmax.f32 %v1211_v40, 0.0  ;;  %v1221_v18 = vmax.f32 %v1213_v4, 0.0  ;;  %v1599_v17 = vmax.f32 %v1591_v35, 0.0 }
 0x15a   :  { %v1925_v6 = vmul.f32 %v4395_v42, %v1754_v29  ;;  %v1927_v11 = vmul.f32 %v4396_v53, %v1795_v36  ;;  %v1601_v21 = vmax.f32 %v1593_v39, 0.0  ;;  %v4397_v43 = vrot.slane %v3979_v14, %v3841_v52  ;;  %v1879_v36 = vpop.f32.mrf.mxu1  ;;  %v1839_v39 = vpop.f32.mrf.mxu0 }
 0x15b   :  { %v4398_v29 = vrot.slane %v3979_v14, %v3847_v57  ;;  %v1230_v34 = vmul.f32 %v1222_v9, %v846_v63  ;;  %v1232_v28 = vmul.f32 %v1224_v0, %v848_v54  ;;  %v1231_v20 = vmul.f32 %v1223_v55, %v847_v50 }
 0x15c   :  { %v1974_v8 = vadd.f32 %v4397_v43, %v1924_v47  ;;  %v1233_v12 = vmul.f32 %v1225_v15, %v849_v27  ;;  %v1606_v16 = vmin.f32 %v1598_v31, 1.0  ;;  %v1608_v44 = vmin.f32 %v1600_v46, 1.0  ;;  %v1880_v47 = vpop.f32.mrf.mxu1  ;;  %v2136_v15 = vpop.f32.mrf.mxu0 }
 0x15d   :  { %v1976_v38 = vadd.f32 %v4398_v29, %v1926_v30  ;;  %v4399_v40 = vrot.slane %v3979_v14, %v3849_v58  ;;  %v1977_v35 = vadd.f32 %v1949_v49, %v1927_v11  ;;  %v4249_v10 = vmin.f32 %v1219_v37, 1.0 }
 0x15e   :  { %v4251_v30 = vmin.f32 %v1221_v18, 1.0  ;;  %v4400_v63 = vrot.slane %v3937_v2, %v3853_v3  ;;  %v4401_v50 = vrot.slane %v3937_v2, %v3855_v5  ;;  %v1607_v9 = vmin.f32 %v1599_v17, 1.0  ;;  %v2177_v31 = vpop.f32.mrf.mxu1 }
 0x15f   :  { %v1975_v4 = vadd.f32 %v4399_v40, %v1925_v6  ;;  %v1609_v0 = vmin.f32 %v1601_v21, 1.0  ;;  %v1982_v55 = vmax.f32 %v1974_v8, 0.0  ;;  %v1984_v49 = vmax.f32 %v1976_v38, 0.0  ;;  %v2138_v8 = vpop.f32.mrf.mxu0 }
 0x160   :  { %v1545_v54 = vmul.f32 %v4400_v63, %v4129_v13  ;;  %v1547_v27 = vmul.f32 %v4401_v50, %v4131_v33  ;;  %v4402_v46 = vrot.slane %v3969_v26, %v3853_v3  ;;  %v4403_v6 = vrot.slane %v3969_v26, %v3855_v5  ;;  %v2179_v29 = vpop.f32.mrf.mxu1 }
 0x161   :  { %v4404_v13 = vrot.slane %v4009_v41, %v3841_v52  ;;  %v4405_v33 = vrot.slane %v4009_v41, %v3847_v57  ;;  %v1614_v18 = vmul.f32 %v1606_v16, %v1230_v34  ;;  %v1616_v17 = vmul.f32 %v1608_v44, %v1232_v28  ;;  %v2140_v63 = vpop.f32.mrf.mxu0 }
 0x162   :  { %v1929_v42 = vmul.f32 %v4402_v46, %v1836_v62  ;;  %v1931_v53 = vmul.f32 %v4403_v6, %v1877_v51  ;;  %v1983_v21 = vmax.f32 %v1975_v4, 0.0  ;;  %v1985_v43 = vmax.f32 %v1977_v35, 0.0 }
 0x163   :  { %v2308_v11 = vmul.f32 %v4404_v13, %v2136_v15  ;;  %v2310_v37 = vmul.f32 %v4405_v33, %v2177_v31  ;;  %v4406_v62 = vrot.slane %v3947_v1, %v3853_v3  ;;  %v4407_v51 = vrot.slane %v3947_v1, %v3855_v5  ;;  %v2141_v33 = vpop.f32.mrf.mxu0 }
 0x164   :  { %v4408_v36 = vrot.slane %v4037_v60, %v3841_v52  ;;  %v4409_v34 = vrot.slane %v4037_v60, %v3847_v57  ;;  %v1990_v16 = vmin.f32 %v1982_v55, 1.0  ;;  %v1992_v44 = vmin.f32 %v1984_v49, 1.0  ;;  %v3454_v33 = vld [vmem:[#allocation10 + $0x138] sm:$0xff]  }
 0x165   :  { %v1595_v38 = vadd.f32 %v4406_v62, %v1545_v54  ;;  %v1597_v7 = vadd.f32 %v4407_v51, %v1547_v27  ;;  %v4410_v4 = vrot.slane %v4009_v41, %v3849_v58  ;;  %v4411_v39 = vrot.slane %v4009_v41, %v3851_v59  ;;  %v2181_v54 = vpop.f32.mrf.mxu1 }
 0x166   :  { %v2358_v40 = vadd.f32 %v4408_v36, %v2308_v11  ;;  %v2360_v28 = vadd.f32 %v4409_v34, %v2310_v37  ;;  %v4412_v52 = vrot.slane %v3979_v14, %v3853_v3  ;;  %v4413_v57 = vrot.slane %v3979_v14, %v3855_v5 }
 0x167   :  { %v2309_v35 = vmul.f32 %v4410_v4, %v2138_v8  ;;  %v2311_v47 = vmul.f32 %v4411_v39, %v2179_v29  ;;  %v1991_v15 = vmin.f32 %v1983_v21, 1.0  ;;  %v1993_v31 = vmin.f32 %v1985_v43, 1.0  ;;  %v2182_v37 = vpop.f32.mrf.mxu1  ;;  %v4303_v21 = vpop.f32.mrf.mxu0 }
 0x168   :  { %v1979_v50 = vadd.f32 %v4412_v52, %v1929_v42  ;;  %v1981_v27 = vadd.f32 %v4413_v57, %v1931_v53  ;;  %v2366_v55 = vmax.f32 %v2358_v40, 0.0  ;;  %v2368_v49 = vmax.f32 %v2360_v28, 0.0  ;;  %v3455_v37 = vld [vmem:[#allocation10 + $0x1b8] sm:$0xff]  }
 0x169   :  { %v4414_v46 = vrot.slane %v4037_v60, %v3849_v58  ;;  %v4415_v13 = vrot.slane %v4037_v60, %v3851_v59  ;;  %v1603_v8 = vmax.f32 %v1595_v38, 0.0  ;;  %v1605_v42 = vmax.f32 %v1597_v7, 0.0  ;;  %v4305_v43 = vpop.f32.mrf.mxu1  ;;  %v2220_v38 = vpop.f32.mrf.mxu0 }
 0x16a   :  { %v2374_v29 = vmin.f32 %v2366_v55, 1.0  ;;  %v2376_v62 = vmin.f32 %v2368_v49, 1.0  ;;  %v1615_v51 = vmul.f32 %v1607_v9, %v1231_v20  ;;  %v1617_v53 = vmul.f32 %v1609_v0, %v1233_v12 }
 0x16b   :  { %v2359_v6 = vadd.f32 %v4414_v46, %v2309_v35  ;;  %v2361_v11 = vadd.f32 %v4415_v13, %v2311_v47  ;;  %v1998_v58 = vmul.f32 %v1990_v16, %v1614_v18  ;;  %v2000_v34 = vmul.f32 %v1992_v44, %v1616_v17  ;;  %v2261_v7 = vpop.f32.mrf.mxu1  ;;  %v2222_v52 = vpop.f32.mrf.mxu0 }
 0x16c   :  { %v1987_v28 = vmax.f32 %v1979_v50, 0.0  ;;  %v1989_v4 = vmax.f32 %v1981_v27, 0.0  ;;  %v1999_v59 = vmul.f32 %v1991_v15, %v1615_v51  ;;  %v2001_v35 = vmul.f32 %v1993_v31, %v1617_v53 }
 0x16d   :  { %v2367_v36 = vmax.f32 %v2359_v6, 0.0  ;;  %v2369_v40 = vmax.f32 %v2361_v11, 0.0  ;;  %v1611_v63 = vmin.f32 %v1603_v8, 1.0  ;;  %v1613_v54 = vmin.f32 %v1605_v42, 1.0  ;;  %v2263_v50 = vpop.f32.mrf.mxu1  ;;  %v2223_v8 = vpop.f32.mrf.mxu0 }
 0x16e   :  { %v2382_v20 = vmul.f32 %v2374_v29, %v1998_v58  ;;  %v2384_v12 = vmul.f32 %v2376_v62, %v2000_v34  ;;  %v4416_v9 = vrot.slane %v4009_v41, %v3853_v3  ;;  %v4417_v18 = vrot.slane %v4009_v41, %v3855_v5  ;;  %v3456_v29 = vld [vmem:[#allocation10 + $0x170] sm:$0xff]  }
 0x16f   :  { %v2375_v39 = vmin.f32 %v2367_v36, 1.0  ;;  %v2377_v47 = vmin.f32 %v2369_v40, 1.0  ;;  %v1235_v57 = vmul.f32 %v4249_v10, %v4233_v45  ;;  %v1237_v27 = vmul.f32 %v4251_v30, %v4235_v32  ;;  %v2264_v42 = vpop.f32.mrf.mxu1  ;;  %v3457_v32 = vld [vmem:[#allocation10 + $0x1f0] sm:$0xff]  }
 0x170   :  { %v2313_v0 = vmul.f32 %v4416_v9, %v2220_v38  ;;  %v2315_v17 = vmul.f32 %v4417_v18, %v2261_v7  ;;  %v1995_v55 = vmin.f32 %v1987_v28, 1.0  ;;  %v1997_v49 = vmin.f32 %v1989_v4, 1.0  ;;  %v3458_v34 = vld [vmem:[#allocation10 + $0x130] sm:$0xff]   ;;  %v3462_v9 = vld [vmem:[#allocation10 + $0x128] sm:$0xff]  }
 0x171   :  { %v2383_v16 = vmul.f32 %v2375_v39, %v1999_v59  ;;  %v2385_v44 = vmul.f32 %v2377_v47, %v2001_v35  ;;  %v4418_v15 = vrot.slane %v4037_v60, %v3853_v3  ;;  %v4419_v46 = vrot.slane %v4037_v60, %v3855_v5  ;;  %v3459_v28 = vld [vmem:[#allocation10 + $0x1b0] sm:$0xff]   ;;  %v3460_v59 = vld [vmem:[#allocation10 + $0x168] sm:$0xff]  }
 0x172   :  { %v2390_v45 = vpack.c.bf16 %v2382_v20, %v2382_v20  ;;  %v2392_v10 = vpack.c.bf16 %v2384_v12, %v2384_v12  ;;  %v1619_v30 = vmul.f32 %v1611_v63, %v1235_v57  ;;  %v1621_v62 = vmul.f32 %v1613_v54, %v1237_v27  ;;  %v3461_v35 = vld [vmem:[#allocation10 + $0x1e8] sm:$0xff]   ;;  %v3466_v27 = vld [vmem:[#allocation10 + $0x120] sm:$0xff]   ;;  %v3474_v8 = vld [vmem:[#allocation10 + $0x110] sm:$0xff]  }
 0x173   :  { %v2363_v31 = vadd.f32 %v4418_v15, %v2313_v0  ;;  %v2365_v6 = vadd.f32 %v4419_v46, %v2315_v17  ;;  %v2391_v13 = vpack.c.bf16 %v2383_v16, %v2383_v16  ;;  %v2393_v11 = vpack.c.bf16 %v2385_v44, %v2385_v44  ;;  %v3463_v0 = vld [vmem:[#allocation10 + $0x1a8] sm:$0xff]   ;;  %v3464_v16 = vld [vmem:[#allocation10 + $0x160] sm:$0xff]   ;;  %v3475_v42 = vld [vmem:[#allocation10 + $0x190] sm:$0xff]  }
 0x174   :  { %v1519_v3 = vrot.slane %v3937_v2, %v3805_v22  ;;  %v2003_v5 = vmul.f32 %v1995_v55, %v1619_v30  ;;  %v2005_v36 = vmul.f32 %v1997_v49, %v1621_v62  ;;  %v1527_v4 = vrot.slane %v3937_v2, %v3807_v23  ;;  %v3467_v55 = vld [vmem:[#allocation10 + $0x1a0] sm:$0xff]   ;;  %v3476_v30 = vld [vmem:[#allocation10 + $0x148] sm:$0xff]  }
 0x175   :  { %v2371_v51 = vmax.f32 %v2363_v31, 0.0  ;;  %v2373_v53 = vmax.f32 %v2365_v6, 0.0  ;;  %2942 = vmatprep.mubr.bf16.mxu0 %v2391_v13  ;;  %2982 = vmatprep.mubr.bf16.mxu1 %v2393_v11  ;;  %v1569_v38 = vrot.slane %v3947_v1, %v3805_v22  ;;  %v1577_v7 = vrot.slane %v3947_v1, %v3807_v23  ;;  %v3471_v6 = vld [vmem:[#allocation10 + $0x198] sm:$0xff]   ;;  %v3477_v62 = vld [vmem:[#allocation10 + $0x1c8] sm:$0xff]  }
 0x176   :  { %2943 = vmatmul.mubr.bf16.vlgmr.msra.gmra.mxu0 %v2390_v45  ;;  %2983 = vmatmul.mubr.bf16.vlgmr.msra.gmra.mxu1 %v2392_v10  ;;  %v1903_v63 = vrot.slane %v3969_v26, %v3805_v22  ;;  %v1911_v54 = vrot.slane %v3969_v26, %v3807_v23  ;;  %v1544_v2 = vmul.f32 %v1519_v3, %v4111_v19  ;;  %v3465_v26 = vld [vmem:[#allocation10 + $0x1e0] sm:$0xff]   ;;  %v3478_v3 = vld [vmem:[#allocation10 + $0x108] sm:$0xff]  }
 0x177   :  { %v2379_v40 = vmin.f32 %v2371_v51, 1.0  ;;  %v2381_v58 = vmin.f32 %v2373_v53, 1.0  ;;  %3317 = vmatpush3.bf16.msra.mxu0 %v3454_v33  ;;  %3339 = vmatpush3.bf16.msra.mxu1 %v3455_v37  ;;  %v1546_v18 = vmul.f32 %v1527_v4, %v4113_v48  ;;  %v2287_v17 = vrot.slane %v4009_v41, %v3805_v22  ;;  %v3472_v33 = vld [vmem:[#allocation10 + $0x150] sm:$0xff]   ;;  %v3481_v4 = vld [vmem:[#allocation10 + $0x1c0] sm:$0xff]  }
 0x178   :  { %3318 = vmatprep.subr.bf16.mxu0 %v3456_v29  ;;  %3340 = vmatprep.subr.bf16.mxu1 %v3457_v32  ;;  %v2295_v1 = vrot.slane %v4009_v41, %v3807_v23  ;;  %v1928_v19 = vmul.f32 %v1903_v63, %v4223_v56  ;;  %v1953_v44 = vrot.slane %v3979_v14, %v3805_v22 }
 0x179   :  { %v2387_v39 = vmul.f32 %v2379_v40, %v2003_v5  ;;  %v2389_v47 = vmul.f32 %v2381_v58, %v2005_v36  ;;  %v1930_v52 = vmul.f32 %v1911_v54, %v4225_v61  ;;  %v1961_v48 = vrot.slane %v3979_v14, %v3807_v23  ;;  %v3468_v61 = vld [vmem:[#allocation10 + $0x158] sm:$0xff]   ;;  %v3479_v5 = vld [vmem:[#allocation10 + $0x188] sm:$0xff]  }
 0x17a   :  { %v1594_v50 = vadd.f32 %v1569_v38, %v1544_v2  ;;  %v2337_v41 = vrot.slane %v4037_v60, %v3805_v22  ;;  %v2345_v57 = vrot.slane %v4037_v60, %v3807_v23  ;;  %v1596_v56 = vadd.f32 %v1577_v7, %v1546_v18  ;;  %v3469_v14 = vld [vmem:[#allocation10 + $0x1d8] sm:$0xff]  }
 0x17b   :  { %3319 = vmatpush3.bf16.msra.mxu0 %v3458_v34  ;;  %3341 = vmatpush3.bf16.msra.mxu1 %v3459_v28  ;;  %v2395_v20 = vpack.c.bf16 %v2387_v39, %v2387_v39  ;;  %v2397_v12 = vpack.c.bf16 %v2389_v47, %v2389_v47  ;;  %v2312_v49 = vmul.f32 %v2287_v17, %v4303_v21  ;;  %v3470_v22 = vld [vmem:[#allocation10 + $0x118] sm:$0xff]   ;;  %v3473_v21 = vld [vmem:[#allocation10 + $0x1d0] sm:$0xff]   ;;  %v3480_v28 = vld [vmem:[#allocation10 + $0x140] sm:$0xff]  }
 0x17c   :  { %3320 = vmatprep.subr.bf16.mxu0 %v3460_v59  ;;  %3342 = vmatprep.subr.bf16.mxu1 %v3461_v35  ;;  %v2314_v15 = vmul.f32 %v2295_v1, %v4305_v43  ;;  %v1978_v31 = vadd.f32 %v1953_v44, %v1928_v19  ;;  %v1980_v46 = vadd.f32 %v1961_v48, %v1930_v52  ;;  %v1602_v23 = vmax.f32 %v1594_v50, 0.0  ;;  %v3482_v39 = vld [vmem:[#allocation10 + $0x100] sm:$0xff]  }
 0x17d   :  { %3022 = vmatprep.mubr.bf16.mxu0 %v2395_v20  ;;  %3062 = vmatprep.mubr.bf16.mxu1 %v2397_v12  ;;  %v1604_v60 = vmax.f32 %v1596_v56, 0.0  ;;  %v2362_v13 = vadd.f32 %v2337_v41, %v2312_v49  ;;  %v3483_v47 = vld [vmem:[#allocation10 + $0x180] sm:$0xff]  }
 0x17e   :  { %v2364_v11 = vadd.f32 %v2345_v57, %v2314_v15  ;;  %v1986_v37 = vmax.f32 %v1978_v31, 0.0  ;;  %v1988_v43 = vmax.f32 %v1980_v46, 0.0  ;;  %v1610_v45 = vmin.f32 %v1602_v23, 1.0 }
 0x17f   :  { %3321 = vmatpush3.bf16.msra.mxu0 %v3462_v9  ;;  %3343 = vmatpush3.bf16.msra.mxu1 %v3463_v0  ;;  %v1612_v10 = vmin.f32 %v1604_v60, 1.0  ;;  %v2370_v29 = vmax.f32 %v2362_v13, 0.0 }
 0x180   :  { %3322 = vmatprep.subr.bf16.mxu0 %v3464_v16  ;;  %3344 = vmatprep.subr.bf16.mxu1 %v3465_v26  ;;  %v2372_v32 = vmax.f32 %v2364_v11, 0.0  ;;  %v1994_v51 = vmin.f32 %v1986_v37, 1.0  ;;  %v1996_v53 = vmin.f32 %v1988_v43, 1.0  ;;  %v1618_v36 = vmul.f32 %v1610_v45, %v4012_v24 }
 0x181   :  { %v1620_v40 = vmul.f32 %v1612_v10, %v4015_v25  ;;  %v2378_v58 = vmin.f32 %v2370_v29, 1.0 }
 0x182   :  { %v2380_v34 = vmin.f32 %v2372_v32, 1.0  ;;  %v2002_v59 = vmul.f32 %v1994_v51, %v1618_v36 }
 0x183   :  { %3323 = vmatpush3.bf16.msra.mxu0 %v3466_v27  ;;  %3345 = vmatpush3.bf16.msra.mxu1 %v3467_v55  ;;  %v2004_v35 = vmul.f32 %v1996_v53, %v1620_v40 }
 0x184   :  { %3324 = vmatprep.subr.bf16.mxu0 %v3468_v61  ;;  %3346 = vmatprep.subr.bf16.mxu1 %v3469_v14  ;;  %v2386_v38 = vmul.f32 %v2378_v58, %v2002_v59 }
 0x185   :  { %v2388_v7 = vmul.f32 %v2380_v34, %v2004_v35 }
 0x186   :  { %v2394_v24 = vpack.c.bf16 %v2386_v38, %v2386_v38 }
 0x187   :  { %3325 = vmatpush3.bf16.msra.mxu0 %v3470_v22  ;;  %3347 = vmatpush3.bf16.msra.mxu1 %v3471_v6  ;;  %v2396_v25 = vpack.c.bf16 %v2388_v7, %v2388_v7 }
 0x188   :  { %3326 = vmatprep.subr.bf16.mxu0 %v3472_v33  ;;  %3348 = vmatprep.subr.bf16.mxu1 %v3473_v21 }
 0x18b   :  { %3327 = vmatpush3.bf16.msra.mxu0 %v3474_v8  ;;  %3349 = vmatpush3.bf16.msra.mxu1 %v3475_v42 }
 0x18c   :  { %3328 = vmatprep.subr.bf16.mxu0 %v3476_v30  ;;  %3350 = vmatprep.subr.bf16.mxu1 %v3477_v62 }
 0x18f   :  { %3329 = vmatpush3.bf16.msra.mxu0 %v3478_v3  ;;  %3351 = vmatpush3.bf16.msra.mxu1 %v3479_v5 }
 0x190   :  { %3330 = vmatprep.subr.bf16.mxu0 %v3480_v28  ;;  %3352 = vmatprep.subr.bf16.mxu1 %v3481_v4 }
 0x193   :  { %3331 = vmatpush3.bf16.msra.mxu0 %v3482_v39  ;;  %3353 = vmatpush3.bf16.msra.mxu1 %v3483_v47 }
 0x196   :  { %3023 = vmatmul.mubr.bf16.vlgmr.msra.gmra.mxu0 %v2394_v24  ;;  %3063 = vmatmul.mubr.bf16.vlgmr.msra.gmra.mxu1 %v2396_v25 }
 0x236   :  { %v3288_v63 = vpop.f32.mrf.mxu0  ;;  %v3310_v54 = vpop.f32.mrf.mxu1 }
 0x238   :  { %v3289_v2 = vpop.f32.mrf.mxu0  ;;  %v3311_v20 = vpop.f32.mrf.mxu1 }
 0x239   :  { %v3290_v17 = vadd.f32 %v3289_v2, %v3288_v63  ;;  %v3312_v1 = vadd.f32 %v3311_v20, %v3310_v54 }
 0x23a   :  { %v3291_v12 = vpop.f32.mrf.mxu0  ;;  %v3313_v9 = vpop.f32.mrf.mxu1 }
 0x23b   :  { %v2985_v52 = vadd.f32 %v3312_v1, %v3290_v17 }
 0x23c   :  { %v3292_v0 = vpop.f32.mrf.mxu0  ;;  %v3314_v18 = vpop.f32.mrf.mxu1 }
 0x256   :  { %v3332_v16 = vpop.f32.mrf.mxu0  ;;  %v3354_v26 = vpop.f32.mrf.mxu1 }
 0x258   :  { %v3333_v19 = vpop.f32.mrf.mxu0  ;;  %v3355_v44 = vpop.f32.mrf.mxu1 }
 0x259   :  { %v3334_v48 = vadd.f32 %v3333_v19, %v3332_v16  ;;  %v3356_v27 = vadd.f32 %v3355_v44, %v3354_v26 }
 0x25a   :  { %v3335_v50 = vpop.f32.mrf.mxu0  ;;  %v3357_v41 = vpop.f32.mrf.mxu1 }
 0x25b   :  { %v3025_v57 = vadd.f32 %v3334_v48, %v2985_v52 }
 0x25c   :  { %v3336_v55 = vpop.f32.mrf.mxu0  ;;  %v3358_v56 = vpop.f32.mrf.mxu1 }
 0x25d   :  { %v3065_v49 = vadd.f32 %v3356_v27, %v3025_v57 }
 0x25f   :  { %3070 = vst [vmem:[#allocation11] sm:$0xff] %v3065_v49 }
 0x260   :  { %3595 = shalt.err (!%p3592_p1)
}
 0x261   :  { %3080 = dma.vmem_to_hbm [thread:$0]  %s3078_s4, 128, %s4363_s5, [#allocation4]  }
 0x262   :  { %3610 = dma.done.wait [#allocation4], 128  }
 0x263   :  { %3611 = vsyncadd [#allocation4], 4294967168 }
 0x264   :  { %3084 = vsyncpa [#allocation3], 1 }
 0x265   :  { %3085 = vsyncpa [#allocation6], 1 }
 0x266   :  { %3086 = vsyncpa [#allocation9], 1 }
 0x267   :  { %3087 = vsyncpa [#allocation4], 1 }

</bundles_post_ra>
